<compile_context>
chip_gen: v7x
topology: tpu7x:2x2x1
jax: 0.10.0
libtpu: 0.0.40
codegen_flags: <defaults>
</compile_context>

<pallas_src>
import jax
import jax.numpy as jnp
from jax import lax
from jax.experimental import pallas as pl
from jax.experimental.pallas import tpu as pltpu

EPS = 1e-5   # nn.LayerNorm default eps
HID = 128    # LSTM hidden size
P = 128      # padded feature width for all MLP hidden dims


def _masked_layernorm(x, gamma, beta, true_d):
    """LayerNorm over the first `true_d` lanes of a P-padded feature axis.

    Pre-condition: padded lanes (>= true_d) of x are exactly zero (guaranteed by the
    zero-padded weights/biases).  gamma/beta are zero in padded lanes, so the output
    is exactly zero there as well.  On the true lanes this matches nn.LayerNorm.
    """
    inv_d = 1.0 / float(true_d)
    mu = jnp.sum(x, axis=-1, keepdims=True) * inv_d
    mask = (lax.broadcasted_iota(jnp.int32, x.shape, x.ndim - 1) < true_d
            ).astype(x.dtype)
    diff = (x - mu) * mask
    var = jnp.sum(diff * diff, axis=-1, keepdims=True) * inv_d
    return diff * lax.rsqrt(var + EPS) * gamma + beta


def _make_dann_kernel(L, N, H):
    """Single fused kernel: feature MLP -> {LSTM + class head, domain MLP}."""

    def kernel(x_ref, w1_ref, b1_ref, g1_ref, be1_ref,
               w2_ref, b2_ref, g2_ref, be2_ref,
               wih_ref, whh_ref, blstm_ref, wc_ref, bc_ref,
               wd1_ref, bd1_ref, gd1_ref, bed1_ref, wd2_ref, bd2_ref,
               out_ref, hall_scr):
        x = x_ref[...]                                              # (M, 4)

        # ---------------- feature extractor ----------------
        # Linear(4,64) -> LN(64) -> ReLU -> Linear(64,50) -> LN(50) -> Sigmoid
        h = jnp.dot(x, w1_ref[...], preferred_element_type=jnp.float32) + b1_ref[...]
        h = _masked_layernorm(h, g1_ref[...], be1_ref[...], 64)
        h = jnp.maximum(h, 0.0)
        h = jnp.dot(h, w2_ref[...], preferred_element_type=jnp.float32) + b2_ref[...]
        h = _masked_layernorm(h, g2_ref[...], be2_ref[...], 50)
        feat = jax.nn.sigmoid(h)                                    # (M, 128)

        # ---------------- domain classifier ----------------
        # (ReverseLayerF == identity in the forward pass)
        # Linear(50,100) -> LN(100) -> ReLU -> Linear(100,1) -> Sigmoid
        d = jnp.dot(feat, wd1_ref[...], preferred_element_type=jnp.float32) + bd1_ref[...]
        d = _masked_layernorm(d, gd1_ref[...], bed1_ref[...], 100)
        d = jnp.maximum(d, 0.0)                                     # (M, 128)
        # lane-dense (1, M) row:  wd2 (1,128) . d^T (128,M)
        dom_row = jax.nn.sigmoid(
            lax.dot_general(wd2_ref[...], d, (((1,), (1,)), ((), ())),
                            preferred_element_type=jnp.float32)
            + bd2_ref[0, 0])                                        # (1, M)

        # ---------------- LSTM (input size 50 -> hidden 128) ----------------
        # Hoist the input projection out of the recurrence: one big matmul.
        zin = (jnp.dot(feat, wih_ref[...], preferred_element_type=jnp.float32)
               + blstm_ref[...])                                    # (M, 4H)
        whh = whh_ref[...]                                          # (H, 4H)

        hprev = jnp.zeros((N, H), jnp.float32)
        cprev = jnp.zeros((N, H), jnp.float32)
        # Fully unrolled time loop (L is small & static); h/c stay in vregs.
        for t in range(L):
            z = zin[t * N:(t + 1) * N, :] + jnp.dot(
                hprev, whh, preferred_element_type=jnp.float32)     # (N, 4H)
            i_g = jax.nn.sigmoid(z[:, 0:H])
            f_g = jax.nn.sigmoid(z[:, H:2 * H])
            g_g = jnp.tanh(z[:, 2 * H:3 * H])
            o_g = jax.nn.sigmoid(z[:, 3 * H:4 * H])
            cprev = f_g * cprev + i_g * g_g
            hprev = o_g * jnp.tanh(cprev)
            hall_scr[t * N:(t + 1) * N, :] = hprev                  # collect h_t

        # ---------------- class head: one lane-dense matmul ----------------
        # wc (1,128) . H_all^T (128,M)  (no sigmoid: matches the reference forward)
        cls_row = (lax.dot_general(wc_ref[...], hall_scr[...], (((1,), (1,)), ((), ())),
                                   preferred_element_type=jnp.float32)
                   + bc_ref[0, 0])                                  # (1, M)

        out_ref[0:1, :] = cls_row
        out_ref[1:2, :] = dom_row

    return kernel


def dann_forward(x, params, alpha=0.0):
    """x: (L, N, 4) float32.  Returns (class_output (L,N,1), domain_output (L,N,1))."""
    del alpha  # forward-pass identity (ReverseLayerF only changes gradients)
    L, N, F = x.shape
    M = L * N
    x2 = x.reshape(M, F)

    vmem = pl.BlockSpec(memory_space=pltpu.MemorySpace.VMEM)
    smem = pl.BlockSpec(memory_space=pltpu.MemorySpace.SMEM)

    # Everything (weights ~0.7 MiB + tiny activations) fits in VMEM -> single call,
    # no grid.  For large M, tile the row axis with a "parallel" grid instead.
    out = pl.pallas_call(
        _make_dann_kernel(L, N, HID),
        out_shape=jax.ShapeDtypeStruct((2, M), jnp.float32),
        in_specs=[vmem] * 13 + [smem] + [vmem] * 5 + [smem],
        out_specs=vmem,
        scratch_shapes=[pltpu.VMEM((M, HID), jnp.float32)],   # all h_t
    )(x2,
      params['w1'], params['b1'], params['g1'], params['be1'],
      params['w2'], params['b2'], params['g2'], params['be2'],
      params['wih'], params['whh'], params['blstm'],
      params['wc'], params['bc'],
      params['wd1'], params['bd1'], params['gd1'], params['bed1'],
      params['wd2'], params['bd2'])

    class_output = out[0].reshape(L, N, 1)
    domain_output = out[1].reshape(L, N, 1)
    return class_output, domain_output


# ---------------------------------------------------------------------------
# Deterministic parameter initialization (shapes from DANNModel.__init__),
# zero-padded to 128-wide feature axes so every in-kernel vreg is lane-dense.
# ---------------------------------------------------------------------------
def init_params(key):
    ks = jax.random.split(key, 10)

    def lin(k, fan_in, fan_out):
        kw, kb = jax.random.split(k)
        bound = 1.0 / (fan_in ** 0.5)
        w = jax.random.uniform(kw, (fan_in, fan_out), jnp.float32, -bound, bound)
        b = jax.random.uniform(kb, (1, fan_out), jnp.float32, -bound, bound)
        return w, b

    def pad(a, rows, cols):
        return jnp.zeros((rows, cols), jnp.float32).at[:a.shape[0], :a.shape[1]].set(a)

    p = {}
    # feature extractor: Linear(4,64) LN(64) ReLU Linear(64,50) LN(50) Sigmoid
    w1, b1 = lin(ks[0], 4, 64)
    p['w1'] = pad(w1, 4, P)
    p['b1'] = pad(b1, 1, P)
    p['g1'] = pad(jnp.ones((1, 64), jnp.float32), 1, P)
    p['be1'] = jnp.zeros((1, P), jnp.float32)
    w2, b2 = lin(ks[1], 64, 50)
    p['w2'] = pad(w2, P, P)
    p['b2'] = pad(b2, 1, P)
    p['g2'] = pad(jnp.ones((1, 50), jnp.float32), 1, P)
    p['be2'] = jnp.zeros((1, P), jnp.float32)
    # LSTM (gate order [i, f, g, o]); biases pre-summed (b_ih + b_hh)
    bound = 1.0 / (HID ** 0.5)
    wih = jax.random.uniform(ks[2], (50, 4 * HID), jnp.float32, -bound, bound)
    p['wih'] = pad(wih, P, 4 * HID)
    p['whh'] = jax.random.uniform(ks[3], (HID, 4 * HID), jnp.float32, -bound, bound)
    b_ih = jax.random.uniform(ks[4], (1, 4 * HID), jnp.float32, -bound, bound)
    b_hh = jax.random.uniform(ks[5], (1, 4 * HID), jnp.float32, -bound, bound)
    p['blstm'] = b_ih + b_hh
    # class head Linear(128,1): stored as a (1,128) row for a lane-dense output matmul
    wc, bc = lin(ks[6], HID, 1)
    p['wc'] = wc.T              # (1, 128)
    p['bc'] = bc                # (1, 1)  -> SMEM scalar
    # domain classifier: Linear(50,100) LN(100) ReLU Linear(100,1) Sigmoid
    wd1, bd1 = lin(ks[7], 50, 100)
    p['wd1'] = pad(wd1, P, P)
    p['bd1'] = pad(bd1, 1, P)
    p['gd1'] = pad(jnp.ones((1, 100), jnp.float32), 1, P)
    p['bed1'] = jnp.zeros((1, P), jnp.float32)
    wd2, bd2 = lin(ks[8], 100, 1)
    p['wd2'] = pad(wd2.T, 1, P)  # (1, 128) row, cols >= 100 zero
    p['bd2'] = bd2               # (1, 1)  -> SMEM scalar
    return p


if __name__ == "__main__":
    key = jax.random.PRNGKey(0)
    k_param, k_x = jax.random.split(key)

    L, N, F = 8, 2, 4  # seq_len, batch, input features
    params = init_params(k_param)
    x = jax.random.normal(k_x, (L, N, F), jnp.float32)

    class_out, domain_out = jax.jit(dann_forward)(x, params, 0.0)
    jax.block_until_ready((class_out, domain_out))

    assert class_out.shape == (L, N, 1)
    assert domain_out.shape == (L, N, 1)
    assert bool(jnp.all(jnp.isfinite(class_out)))
    assert bool(jnp.all(jnp.isfinite(domain_out)))
    print("KERNEL_OK")
</pallas_src>

<mosaic_0001>
module attributes {stable_mosaic.version = 11 : i64} {
  func.func @kernel(%arg0: memref<16x4xf32, #tpu.memory_space<vmem>>, %arg1: memref<4x128xf32, #tpu.memory_space<vmem>>, %arg2: memref<1x128xf32, #tpu.memory_space<vmem>>, %arg3: memref<1x128xf32, #tpu.memory_space<vmem>>, %arg4: memref<1x128xf32, #tpu.memory_space<vmem>>, %arg5: memref<128x128xf32, #tpu.memory_space<vmem>>, %arg6: memref<1x128xf32, #tpu.memory_space<vmem>>, %arg7: memref<1x128xf32, #tpu.memory_space<vmem>>, %arg8: memref<1x128xf32, #tpu.memory_space<vmem>>, %arg9: memref<128x512xf32, #tpu.memory_space<vmem>>, %arg10: memref<128x512xf32, #tpu.memory_space<vmem>>, %arg11: memref<1x512xf32, #tpu.memory_space<vmem>>, %arg12: memref<1x128xf32, #tpu.memory_space<vmem>>, %arg13: memref<1x1xf32, #tpu.memory_space<smem>>, %arg14: memref<128x128xf32, #tpu.memory_space<vmem>>, %arg15: memref<1x128xf32, #tpu.memory_space<vmem>>, %arg16: memref<1x128xf32, #tpu.memory_space<vmem>>, %arg17: memref<1x128xf32, #tpu.memory_space<vmem>>, %arg18: memref<1x128xf32, #tpu.memory_space<vmem>>, %arg19: memref<1x1xf32, #tpu.memory_space<smem>>, %arg20: memref<2x16xf32, #tpu.memory_space<vmem>>, %arg21: memref<16x128xf32, #tpu.memory_space<vmem>>) attributes {dimension_semantics = [], scalar_prefetch = 0 : i64, scratch_operands = 1 : i64, tpu.core_type = #tpu.core_type<tc>} {
    %c0 = arith.constant 0 : index
    %c0_0 = arith.constant 0 : index
    %0 = vector.load %arg0[%c0, %c0_0] : memref<16x4xf32, #tpu.memory_space<vmem>>, vector<16x4xf32>
    %c0_1 = arith.constant 0 : index
    %c0_2 = arith.constant 0 : index
    %1 = vector.load %arg1[%c0_1, %c0_2] : memref<4x128xf32, #tpu.memory_space<vmem>>, vector<4x128xf32>
    %cst = arith.constant dense<0.000000e+00> : vector<16x128xf32>
    %2 = tpu.matmul %0, %1, %cst {dimension_numbers = #tpu.dot_dimension_numbers<[1], [0], [0], [1], [0, 0, 1, 1], [], []>} : vector<16x4xf32>, vector<4x128xf32>, vector<16x128xf32> -> vector<16x128xf32>
    %c0_3 = arith.constant 0 : index
    %c0_4 = arith.constant 0 : index
    %3 = vector.load %arg2[%c0_3, %c0_4] : memref<1x128xf32, #tpu.memory_space<vmem>>, vector<1x128xf32>
    %4 = vector.broadcast %3 : vector<1x128xf32> to vector<16x128xf32>
    %5 = arith.addf %2, %4 : vector<16x128xf32>
    %c0_5 = arith.constant 0 : index
    %c0_6 = arith.constant 0 : index
    %6 = vector.load %arg3[%c0_5, %c0_6] : memref<1x128xf32, #tpu.memory_space<vmem>>, vector<1x128xf32>
    %c0_7 = arith.constant 0 : index
    %c0_8 = arith.constant 0 : index
    %7 = vector.load %arg4[%c0_7, %c0_8] : memref<1x128xf32, #tpu.memory_space<vmem>>, vector<1x128xf32>
    %cst_9 = arith.constant dense<0.000000e+00> : vector<16xf32>
    %8 = vector.multi_reduction <add>, %5, %cst_9 [1] : vector<16x128xf32> to vector<16xf32>
    %9 = vector.shape_cast %8 : vector<16xf32> to vector<16x1xf32>
    %cst_10 = arith.constant 1.562500e-02 : f32
    %10 = vector.broadcast %cst_10 : f32 to vector<16x1xf32>
    %11 = arith.mulf %9, %10 : vector<16x1xf32>
    %12 = tpu.iota {dimensions = array<i32: 1>} : vector<16x128xi32>
    %c64_i32 = arith.constant 64 : i32
    %13 = vector.broadcast %c64_i32 : i32 to vector<16x128xi32>
    %14 = arith.cmpi slt, %12, %13 : vector<16x128xi32>
    %15 = arith.extui %14 : vector<16x128xi1> to vector<16x128xi32>
    %16 = arith.sitofp %15 : vector<16x128xi32> to vector<16x128xf32>
    %17 = vector.broadcast %11 : vector<16x1xf32> to vector<16x128xf32>
    %18 = arith.subf %5, %17 : vector<16x128xf32>
    %19 = arith.mulf %18, %16 : vector<16x128xf32>
    %20 = arith.mulf %19, %19 : vector<16x128xf32>
    %cst_11 = arith.constant dense<0.000000e+00> : vector<16xf32>
    %21 = vector.multi_reduction <add>, %20, %cst_11 [1] : vector<16x128xf32> to vector<16xf32>
    %22 = vector.shape_cast %21 : vector<16xf32> to vector<16x1xf32>
    %cst_12 = arith.constant 1.562500e-02 : f32
    %23 = vector.broadcast %cst_12 : f32 to vector<16x1xf32>
    %24 = arith.mulf %22, %23 : vector<16x1xf32>
    %cst_13 = arith.constant 9.99999974E-6 : f32
    %25 = vector.broadcast %cst_13 : f32 to vector<16x1xf32>
    %26 = arith.addf %24, %25 : vector<16x1xf32>
    %27 = math.rsqrt %26 : vector<16x1xf32>
    %28 = vector.broadcast %27 : vector<16x1xf32> to vector<16x128xf32>
    %29 = arith.mulf %19, %28 : vector<16x128xf32>
    %30 = vector.broadcast %6 : vector<1x128xf32> to vector<16x128xf32>
    %31 = arith.mulf %29, %30 : vector<16x128xf32>
    %32 = vector.broadcast %7 : vector<1x128xf32> to vector<16x128xf32>
    %33 = arith.addf %31, %32 : vector<16x128xf32>
    %cst_14 = arith.constant 0.000000e+00 : f32
    %34 = vector.broadcast %cst_14 : f32 to vector<16x128xf32>
    %35 = arith.maximumf %33, %34 : vector<16x128xf32>
    %c0_15 = arith.constant 0 : index
    %c0_16 = arith.constant 0 : index
    %36 = vector.load %arg5[%c0_15, %c0_16] : memref<128x128xf32, #tpu.memory_space<vmem>>, vector<128x128xf32>
    %cst_17 = arith.constant dense<0.000000e+00> : vector<16x128xf32>
    %37 = tpu.matmul %35, %36, %cst_17 {dimension_numbers = #tpu.dot_dimension_numbers<[1], [0], [0], [1], [0, 0, 1, 1], [], []>} : vector<16x128xf32>, vector<128x128xf32>, vector<16x128xf32> -> vector<16x128xf32>
    %c0_18 = arith.constant 0 : index
    %c0_19 = arith.constant 0 : index
    %38 = vector.load %arg6[%c0_18, %c0_19] : memref<1x128xf32, #tpu.memory_space<vmem>>, vector<1x128xf32>
    %39 = vector.broadcast %38 : vector<1x128xf32> to vector<16x128xf32>
    %40 = arith.addf %37, %39 : vector<16x128xf32>
    %c0_20 = arith.constant 0 : index
    %c0_21 = arith.constant 0 : index
    %41 = vector.load %arg7[%c0_20, %c0_21] : memref<1x128xf32, #tpu.memory_space<vmem>>, vector<1x128xf32>
    %c0_22 = arith.constant 0 : index
    %c0_23 = arith.constant 0 : index
    %42 = vector.load %arg8[%c0_22, %c0_23] : memref<1x128xf32, #tpu.memory_space<vmem>>, vector<1x128xf32>
    %cst_24 = arith.constant dense<0.000000e+00> : vector<16xf32>
    %43 = vector.multi_reduction <add>, %40, %cst_24 [1] : vector<16x128xf32> to vector<16xf32>
    %44 = vector.shape_cast %43 : vector<16xf32> to vector<16x1xf32>
    %cst_25 = arith.constant 2.000000e-02 : f32
    %45 = vector.broadcast %cst_25 : f32 to vector<16x1xf32>
    %46 = arith.mulf %44, %45 : vector<16x1xf32>
    %47 = tpu.iota {dimensions = array<i32: 1>} : vector<16x128xi32>
    %c50_i32 = arith.constant 50 : i32
    %48 = vector.broadcast %c50_i32 : i32 to vector<16x128xi32>
    %49 = arith.cmpi slt, %47, %48 : vector<16x128xi32>
    %50 = arith.extui %49 : vector<16x128xi1> to vector<16x128xi32>
    %51 = arith.sitofp %50 : vector<16x128xi32> to vector<16x128xf32>
    %52 = vector.broadcast %46 : vector<16x1xf32> to vector<16x128xf32>
    %53 = arith.subf %40, %52 : vector<16x128xf32>
    %54 = arith.mulf %53, %51 : vector<16x128xf32>
    %55 = arith.mulf %54, %54 : vector<16x128xf32>
    %cst_26 = arith.constant dense<0.000000e+00> : vector<16xf32>
    %56 = vector.multi_reduction <add>, %55, %cst_26 [1] : vector<16x128xf32> to vector<16xf32>
    %57 = vector.shape_cast %56 : vector<16xf32> to vector<16x1xf32>
    %cst_27 = arith.constant 2.000000e-02 : f32
    %58 = vector.broadcast %cst_27 : f32 to vector<16x1xf32>
    %59 = arith.mulf %57, %58 : vector<16x1xf32>
    %cst_28 = arith.constant 9.99999974E-6 : f32
    %60 = vector.broadcast %cst_28 : f32 to vector<16x1xf32>
    %61 = arith.addf %59, %60 : vector<16x1xf32>
    %62 = math.rsqrt %61 : vector<16x1xf32>
    %63 = vector.broadcast %62 : vector<16x1xf32> to vector<16x128xf32>
    %64 = arith.mulf %54, %63 : vector<16x128xf32>
    %65 = vector.broadcast %41 : vector<1x128xf32> to vector<16x128xf32>
    %66 = arith.mulf %64, %65 : vector<16x128xf32>
    %67 = vector.broadcast %42 : vector<1x128xf32> to vector<16x128xf32>
    %68 = arith.addf %66, %67 : vector<16x128xf32>
    %69 = arith.negf %68 : vector<16x128xf32>
    %70 = math.exp %69 : vector<16x128xf32>
    %cst_29 = arith.constant 1.000000e+00 : f32
    %71 = vector.broadcast %cst_29 : f32 to vector<16x128xf32>
    %72 = arith.addf %71, %70 : vector<16x128xf32>
    %73 = arith.divf %71, %72 : vector<16x128xf32>
    %c0_30 = arith.constant 0 : index
    %c0_31 = arith.constant 0 : index
    %74 = vector.load %arg14[%c0_30, %c0_31] : memref<128x128xf32, #tpu.memory_space<vmem>>, vector<128x128xf32>
    %cst_32 = arith.constant dense<0.000000e+00> : vector<16x128xf32>
    %75 = tpu.matmul %73, %74, %cst_32 {dimension_numbers = #tpu.dot_dimension_numbers<[1], [0], [0], [1], [0, 0, 1, 1], [], []>} : vector<16x128xf32>, vector<128x128xf32>, vector<16x128xf32> -> vector<16x128xf32>
    %c0_33 = arith.constant 0 : index
    %c0_34 = arith.constant 0 : index
    %76 = vector.load %arg15[%c0_33, %c0_34] : memref<1x128xf32, #tpu.memory_space<vmem>>, vector<1x128xf32>
    %77 = vector.broadcast %76 : vector<1x128xf32> to vector<16x128xf32>
    %78 = arith.addf %75, %77 : vector<16x128xf32>
    %c0_35 = arith.constant 0 : index
    %c0_36 = arith.constant 0 : index
    %79 = vector.load %arg16[%c0_35, %c0_36] : memref<1x128xf32, #tpu.memory_space<vmem>>, vector<1x128xf32>
    %c0_37 = arith.constant 0 : index
    %c0_38 = arith.constant 0 : index
    %80 = vector.load %arg17[%c0_37, %c0_38] : memref<1x128xf32, #tpu.memory_space<vmem>>, vector<1x128xf32>
    %cst_39 = arith.constant dense<0.000000e+00> : vector<16xf32>
    %81 = vector.multi_reduction <add>, %78, %cst_39 [1] : vector<16x128xf32> to vector<16xf32>
    %82 = vector.shape_cast %81 : vector<16xf32> to vector<16x1xf32>
    %cst_40 = arith.constant 0.00999999977 : f32
    %83 = vector.broadcast %cst_40 : f32 to vector<16x1xf32>
    %84 = arith.mulf %82, %83 : vector<16x1xf32>
    %85 = tpu.iota {dimensions = array<i32: 1>} : vector<16x128xi32>
    %c100_i32 = arith.constant 100 : i32
    %86 = vector.broadcast %c100_i32 : i32 to vector<16x128xi32>
    %87 = arith.cmpi slt, %85, %86 : vector<16x128xi32>
    %88 = arith.extui %87 : vector<16x128xi1> to vector<16x128xi32>
    %89 = arith.sitofp %88 : vector<16x128xi32> to vector<16x128xf32>
    %90 = vector.broadcast %84 : vector<16x1xf32> to vector<16x128xf32>
    %91 = arith.subf %78, %90 : vector<16x128xf32>
    %92 = arith.mulf %91, %89 : vector<16x128xf32>
    %93 = arith.mulf %92, %92 : vector<16x128xf32>
    %cst_41 = arith.constant dense<0.000000e+00> : vector<16xf32>
    %94 = vector.multi_reduction <add>, %93, %cst_41 [1] : vector<16x128xf32> to vector<16xf32>
    %95 = vector.shape_cast %94 : vector<16xf32> to vector<16x1xf32>
    %cst_42 = arith.constant 0.00999999977 : f32
    %96 = vector.broadcast %cst_42 : f32 to vector<16x1xf32>
    %97 = arith.mulf %95, %96 : vector<16x1xf32>
    %cst_43 = arith.constant 9.99999974E-6 : f32
    %98 = vector.broadcast %cst_43 : f32 to vector<16x1xf32>
    %99 = arith.addf %97, %98 : vector<16x1xf32>
    %100 = math.rsqrt %99 : vector<16x1xf32>
    %101 = vector.broadcast %100 : vector<16x1xf32> to vector<16x128xf32>
    %102 = arith.mulf %92, %101 : vector<16x128xf32>
    %103 = vector.broadcast %79 : vector<1x128xf32> to vector<16x128xf32>
    %104 = arith.mulf %102, %103 : vector<16x128xf32>
    %105 = vector.broadcast %80 : vector<1x128xf32> to vector<16x128xf32>
    %106 = arith.addf %104, %105 : vector<16x128xf32>
    %cst_44 = arith.constant 0.000000e+00 : f32
    %107 = vector.broadcast %cst_44 : f32 to vector<16x128xf32>
    %108 = arith.maximumf %106, %107 : vector<16x128xf32>
    %c0_45 = arith.constant 0 : index
    %c0_46 = arith.constant 0 : index
    %109 = vector.load %arg18[%c0_45, %c0_46] : memref<1x128xf32, #tpu.memory_space<vmem>>, vector<1x128xf32>
    %cst_47 = arith.constant dense<0.000000e+00> : vector<1x16xf32>
    %110 = tpu.matmul %109, %108, %cst_47 {dimension_numbers = #tpu.dot_dimension_numbers<[1], [1], [0], [0], [0, 0, 1, 0], [], []>} : vector<1x128xf32>, vector<16x128xf32>, vector<1x16xf32> -> vector<1x16xf32>
    %c0_48 = arith.constant 0 : index
    %c0_49 = arith.constant 0 : index
    %111 = memref.load %arg19[%c0_48, %c0_49] : memref<1x1xf32, #tpu.memory_space<smem>>
    %112 = vector.broadcast %111 : f32 to vector<1x16xf32>
    %113 = arith.addf %110, %112 : vector<1x16xf32>
    %114 = arith.negf %113 : vector<1x16xf32>
    %115 = math.exp %114 : vector<1x16xf32>
    %cst_50 = arith.constant 1.000000e+00 : f32
    %116 = vector.broadcast %cst_50 : f32 to vector<1x16xf32>
    %117 = arith.addf %116, %115 : vector<1x16xf32>
    %118 = arith.divf %116, %117 : vector<1x16xf32>
    %c0_51 = arith.constant 0 : index
    %c0_52 = arith.constant 0 : index
    %119 = vector.load %arg9[%c0_51, %c0_52] : memref<128x512xf32, #tpu.memory_space<vmem>>, vector<128x512xf32>
    %cst_53 = arith.constant dense<0.000000e+00> : vector<16x512xf32>
    %120 = tpu.matmul %73, %119, %cst_53 {dimension_numbers = #tpu.dot_dimension_numbers<[1], [0], [0], [1], [0, 0, 1, 1], [], []>} : vector<16x128xf32>, vector<128x512xf32>, vector<16x512xf32> -> vector<16x512xf32>
    %c0_54 = arith.constant 0 : index
    %c0_55 = arith.constant 0 : index
    %121 = vector.load %arg11[%c0_54, %c0_55] : memref<1x512xf32, #tpu.memory_space<vmem>>, vector<1x512xf32>
    %122 = vector.broadcast %121 : vector<1x512xf32> to vector<16x512xf32>
    %123 = arith.addf %120, %122 : vector<16x512xf32>
    %c0_56 = arith.constant 0 : index
    %c0_57 = arith.constant 0 : index
    %124 = vector.load %arg10[%c0_56, %c0_57] : memref<128x512xf32, #tpu.memory_space<vmem>>, vector<128x512xf32>
    %cst_58 = arith.constant 0.000000e+00 : f32
    %125 = vector.broadcast %cst_58 : f32 to vector<2x128xf32>
    %cst_59 = arith.constant 0.000000e+00 : f32
    %126 = vector.broadcast %cst_59 : f32 to vector<2x128xf32>
    %127 = vector.extract_strided_slice %123 {offsets = [0, 0], sizes = [2, 512], strides = [1, 1]} : vector<16x512xf32> to vector<2x512xf32>
    %cst_60 = arith.constant dense<0.000000e+00> : vector<2x512xf32>
    %128 = tpu.matmul %125, %124, %cst_60 {dimension_numbers = #tpu.dot_dimension_numbers<[1], [0], [0], [1], [0, 0, 1, 1], [], []>} : vector<2x128xf32>, vector<128x512xf32>, vector<2x512xf32> -> vector<2x512xf32>
    %129 = arith.addf %127, %128 : vector<2x512xf32>
    %130 = vector.extract_strided_slice %129 {offsets = [0, 0], sizes = [2, 128], strides = [1, 1]} : vector<2x512xf32> to vector<2x128xf32>
    %131 = arith.negf %130 : vector<2x128xf32>
    %132 = math.exp %131 : vector<2x128xf32>
    %cst_61 = arith.constant 1.000000e+00 : f32
    %133 = vector.broadcast %cst_61 : f32 to vector<2x128xf32>
    %134 = arith.addf %133, %132 : vector<2x128xf32>
    %135 = arith.divf %133, %134 : vector<2x128xf32>
    %136 = vector.extract_strided_slice %129 {offsets = [0, 128], sizes = [2, 128], strides = [1, 1]} : vector<2x512xf32> to vector<2x128xf32>
    %137 = arith.negf %136 : vector<2x128xf32>
    %138 = math.exp %137 : vector<2x128xf32>
    %cst_62 = arith.constant 1.000000e+00 : f32
    %139 = vector.broadcast %cst_62 : f32 to vector<2x128xf32>
    %140 = arith.addf %139, %138 : vector<2x128xf32>
    %141 = arith.divf %139, %140 : vector<2x128xf32>
    %142 = vector.extract_strided_slice %129 {offsets = [0, 256], sizes = [2, 128], strides = [1, 1]} : vector<2x512xf32> to vector<2x128xf32>
    %143 = math.tanh %142 : vector<2x128xf32>
    %144 = vector.extract_strided_slice %129 {offsets = [0, 384], sizes = [2, 128], strides = [1, 1]} : vector<2x512xf32> to vector<2x128xf32>
    %145 = arith.negf %144 : vector<2x128xf32>
    %146 = math.exp %145 : vector<2x128xf32>
    %cst_63 = arith.constant 1.000000e+00 : f32
    %147 = vector.broadcast %cst_63 : f32 to vector<2x128xf32>
    %148 = arith.addf %147, %146 : vector<2x128xf32>
    %149 = arith.divf %147, %148 : vector<2x128xf32>
    %150 = arith.mulf %141, %126 : vector<2x128xf32>
    %151 = arith.mulf %135, %143 : vector<2x128xf32>
    %152 = arith.addf %150, %151 : vector<2x128xf32>
    %153 = math.tanh %152 : vector<2x128xf32>
    %154 = arith.mulf %149, %153 : vector<2x128xf32>
    %c0_64 = arith.constant 0 : index
    %c0_65 = arith.constant 0 : index
    %155 = vector.load %arg21[%c0_64, %c0_65] : memref<16x128xf32, #tpu.memory_space<vmem>>, vector<2x128xf32>
    tpu.vector_store %arg21[%c0_64, %c0_65], %154 {strides = array<i32>} : memref<16x128xf32, #tpu.memory_space<vmem>>, vector<2x128xf32>,
    %156 = vector.extract_strided_slice %123 {offsets = [2, 0], sizes = [2, 512], strides = [1, 1]} : vector<16x512xf32> to vector<2x512xf32>
    %cst_66 = arith.constant dense<0.000000e+00> : vector<2x512xf32>
    %157 = tpu.matmul %154, %124, %cst_66 {dimension_numbers = #tpu.dot_dimension_numbers<[1], [0], [0], [1], [0, 0, 1, 1], [], []>} : vector<2x128xf32>, vector<128x512xf32>, vector<2x512xf32> -> vector<2x512xf32>
    %158 = arith.addf %156, %157 : vector<2x512xf32>
    %159 = vector.extract_strided_slice %158 {offsets = [0, 0], sizes = [2, 128], strides = [1, 1]} : vector<2x512xf32> to vector<2x128xf32>
    %160 = arith.negf %159 : vector<2x128xf32>
    %161 = math.exp %160 : vector<2x128xf32>
    %cst_67 = arith.constant 1.000000e+00 : f32
    %162 = vector.broadcast %cst_67 : f32 to vector<2x128xf32>
    %163 = arith.addf %162, %161 : vector<2x128xf32>
    %164 = arith.divf %162, %163 : vector<2x128xf32>
    %165 = vector.extract_strided_slice %158 {offsets = [0, 128], sizes = [2, 128], strides = [1, 1]} : vector<2x512xf32> to vector<2x128xf32>
    %166 = arith.negf %165 : vector<2x128xf32>
    %167 = math.exp %166 : vector<2x128xf32>
    %cst_68 = arith.constant 1.000000e+00 : f32
    %168 = vector.broadcast %cst_68 : f32 to vector<2x128xf32>
    %169 = arith.addf %168, %167 : vector<2x128xf32>
    %170 = arith.divf %168, %169 : vector<2x128xf32>
    %171 = vector.extract_strided_slice %158 {offsets = [0, 256], sizes = [2, 128], strides = [1, 1]} : vector<2x512xf32> to vector<2x128xf32>
    %172 = math.tanh %171 : vector<2x128xf32>
    %173 = vector.extract_strided_slice %158 {offsets = [0, 384], sizes = [2, 128], strides = [1, 1]} : vector<2x512xf32> to vector<2x128xf32>
    %174 = arith.negf %173 : vector<2x128xf32>
    %175 = math.exp %174 : vector<2x128xf32>
    %cst_69 = arith.constant 1.000000e+00 : f32
    %176 = vector.broadcast %cst_69 : f32 to vector<2x128xf32>
    %177 = arith.addf %176, %175 : vector<2x128xf32>
    %178 = arith.divf %176, %177 : vector<2x128xf32>
    %179 = arith.mulf %170, %152 : vector<2x128xf32>
    %180 = arith.mulf %164, %172 : vector<2x128xf32>
    %181 = arith.addf %179, %180 : vector<2x128xf32>
    %182 = math.tanh %181 : vector<2x128xf32>
    %183 = arith.mulf %178, %182 : vector<2x128xf32>
    %c2 = arith.constant 2 : index
    %c0_70 = arith.constant 0 : index
    %184 = vector.load %arg21[%c2, %c0_70] : memref<16x128xf32, #tpu.memory_space<vmem>>, vector<2x128xf32>
    tpu.vector_store %arg21[%c2, %c0_70], %183 {strides = array<i32>} : memref<16x128xf32, #tpu.memory_space<vmem>>, vector<2x128xf32>,
    %185 = vector.extract_strided_slice %123 {offsets = [4, 0], sizes = [2, 512], strides = [1, 1]} : vector<16x512xf32> to vector<2x512xf32>
    %cst_71 = arith.constant dense<0.000000e+00> : vector<2x512xf32>
    %186 = tpu.matmul %183, %124, %cst_71 {dimension_numbers = #tpu.dot_dimension_numbers<[1], [0], [0], [1], [0, 0, 1, 1], [], []>} : vector<2x128xf32>, vector<128x512xf32>, vector<2x512xf32> -> vector<2x512xf32>
    %187 = arith.addf %185, %186 : vector<2x512xf32>
    %188 = vector.extract_strided_slice %187 {offsets = [0, 0], sizes = [2, 128], strides = [1, 1]} : vector<2x512xf32> to vector<2x128xf32>
    %189 = arith.negf %188 : vector<2x128xf32>
    %190 = math.exp %189 : vector<2x128xf32>
    %cst_72 = arith.constant 1.000000e+00 : f32
    %191 = vector.broadcast %cst_72 : f32 to vector<2x128xf32>
    %192 = arith.addf %191, %190 : vector<2x128xf32>
    %193 = arith.divf %191, %192 : vector<2x128xf32>
    %194 = vector.extract_strided_slice %187 {offsets = [0, 128], sizes = [2, 128], strides = [1, 1]} : vector<2x512xf32> to vector<2x128xf32>
    %195 = arith.negf %194 : vector<2x128xf32>
    %196 = math.exp %195 : vector<2x128xf32>
    %cst_73 = arith.constant 1.000000e+00 : f32
    %197 = vector.broadcast %cst_73 : f32 to vector<2x128xf32>
    %198 = arith.addf %197, %196 : vector<2x128xf32>
    %199 = arith.divf %197, %198 : vector<2x128xf32>
    %200 = vector.extract_strided_slice %187 {offsets = [0, 256], sizes = [2, 128], strides = [1, 1]} : vector<2x512xf32> to vector<2x128xf32>
    %201 = math.tanh %200 : vector<2x128xf32>
    %202 = vector.extract_strided_slice %187 {offsets = [0, 384], sizes = [2, 128], strides = [1, 1]} : vector<2x512xf32> to vector<2x128xf32>
    %203 = arith.negf %202 : vector<2x128xf32>
    %204 = math.exp %203 : vector<2x128xf32>
    %cst_74 = arith.constant 1.000000e+00 : f32
    %205 = vector.broadcast %cst_74 : f32 to vector<2x128xf32>
    %206 = arith.addf %205, %204 : vector<2x128xf32>
    %207 = arith.divf %205, %206 : vector<2x128xf32>
    %208 = arith.mulf %199, %181 : vector<2x128xf32>
    %209 = arith.mulf %193, %201 : vector<2x128xf32>
    %210 = arith.addf %208, %209 : vector<2x128xf32>
    %211 = math.tanh %210 : vector<2x128xf32>
    %212 = arith.mulf %207, %211 : vector<2x128xf32>
    %c4 = arith.constant 4 : index
    %c0_75 = arith.constant 0 : index
    %213 = vector.load %arg21[%c4, %c0_75] : memref<16x128xf32, #tpu.memory_space<vmem>>, vector<2x128xf32>
    tpu.vector_store %arg21[%c4, %c0_75], %212 {strides = array<i32>} : memref<16x128xf32, #tpu.memory_space<vmem>>, vector<2x128xf32>,
    %214 = vector.extract_strided_slice %123 {offsets = [6, 0], sizes = [2, 512], strides = [1, 1]} : vector<16x512xf32> to vector<2x512xf32>
    %cst_76 = arith.constant dense<0.000000e+00> : vector<2x512xf32>
    %215 = tpu.matmul %212, %124, %cst_76 {dimension_numbers = #tpu.dot_dimension_numbers<[1], [0], [0], [1], [0, 0, 1, 1], [], []>} : vector<2x128xf32>, vector<128x512xf32>, vector<2x512xf32> -> vector<2x512xf32>
    %216 = arith.addf %214, %215 : vector<2x512xf32>
    %217 = vector.extract_strided_slice %216 {offsets = [0, 0], sizes = [2, 128], strides = [1, 1]} : vector<2x512xf32> to vector<2x128xf32>
    %218 = arith.negf %217 : vector<2x128xf32>
    %219 = math.exp %218 : vector<2x128xf32>
    %cst_77 = arith.constant 1.000000e+00 : f32
    %220 = vector.broadcast %cst_77 : f32 to vector<2x128xf32>
    %221 = arith.addf %220, %219 : vector<2x128xf32>
    %222 = arith.divf %220, %221 : vector<2x128xf32>
    %223 = vector.extract_strided_slice %216 {offsets = [0, 128], sizes = [2, 128], strides = [1, 1]} : vector<2x512xf32> to vector<2x128xf32>
    %224 = arith.negf %223 : vector<2x128xf32>
    %225 = math.exp %224 : vector<2x128xf32>
    %cst_78 = arith.constant 1.000000e+00 : f32
    %226 = vector.broadcast %cst_78 : f32 to vector<2x128xf32>
    %227 = arith.addf %226, %225 : vector<2x128xf32>
    %228 = arith.divf %226, %227 : vector<2x128xf32>
    %229 = vector.extract_strided_slice %216 {offsets = [0, 256], sizes = [2, 128], strides = [1, 1]} : vector<2x512xf32> to vector<2x128xf32>
    %230 = math.tanh %229 : vector<2x128xf32>
    %231 = vector.extract_strided_slice %216 {offsets = [0, 384], sizes = [2, 128], strides = [1, 1]} : vector<2x512xf32> to vector<2x128xf32>
    %232 = arith.negf %231 : vector<2x128xf32>
    %233 = math.exp %232 : vector<2x128xf32>
    %cst_79 = arith.constant 1.000000e+00 : f32
    %234 = vector.broadcast %cst_79 : f32 to vector<2x128xf32>
    %235 = arith.addf %234, %233 : vector<2x128xf32>
    %236 = arith.divf %234, %235 : vector<2x128xf32>
    %237 = arith.mulf %228, %210 : vector<2x128xf32>
    %238 = arith.mulf %222, %230 : vector<2x128xf32>
    %239 = arith.addf %237, %238 : vector<2x128xf32>
    %240 = math.tanh %239 : vector<2x128xf32>
    %241 = arith.mulf %236, %240 : vector<2x128xf32>
    %c6 = arith.constant 6 : index
    %c0_80 = arith.constant 0 : index
    %242 = vector.load %arg21[%c6, %c0_80] : memref<16x128xf32, #tpu.memory_space<vmem>>, vector<2x128xf32>
    tpu.vector_store %arg21[%c6, %c0_80], %241 {strides = array<i32>} : memref<16x128xf32, #tpu.memory_space<vmem>>, vector<2x128xf32>,
    %243 = vector.extract_strided_slice %123 {offsets = [8, 0], sizes = [2, 512], strides = [1, 1]} : vector<16x512xf32> to vector<2x512xf32>
    %cst_81 = arith.constant dense<0.000000e+00> : vector<2x512xf32>
    %244 = tpu.matmul %241, %124, %cst_81 {dimension_numbers = #tpu.dot_dimension_numbers<[1], [0], [0], [1], [0, 0, 1, 1], [], []>} : vector<2x128xf32>, vector<128x512xf32>, vector<2x512xf32> -> vector<2x512xf32>
    %245 = arith.addf %243, %244 : vector<2x512xf32>
    %246 = vector.extract_strided_slice %245 {offsets = [0, 0], sizes = [2, 128], strides = [1, 1]} : vector<2x512xf32> to vector<2x128xf32>
    %247 = arith.negf %246 : vector<2x128xf32>
    %248 = math.exp %247 : vector<2x128xf32>
    %cst_82 = arith.constant 1.000000e+00 : f32
    %249 = vector.broadcast %cst_82 : f32 to vector<2x128xf32>
    %250 = arith.addf %249, %248 : vector<2x128xf32>
    %251 = arith.divf %249, %250 : vector<2x128xf32>
    %252 = vector.extract_strided_slice %245 {offsets = [0, 128], sizes = [2, 128], strides = [1, 1]} : vector<2x512xf32> to vector<2x128xf32>
    %253 = arith.negf %252 : vector<2x128xf32>
    %254 = math.exp %253 : vector<2x128xf32>
    %cst_83 = arith.constant 1.000000e+00 : f32
    %255 = vector.broadcast %cst_83 : f32 to vector<2x128xf32>
    %256 = arith.addf %255, %254 : vector<2x128xf32>
    %257 = arith.divf %255, %256 : vector<2x128xf32>
    %258 = vector.extract_strided_slice %245 {offsets = [0, 256], sizes = [2, 128], strides = [1, 1]} : vector<2x512xf32> to vector<2x128xf32>
    %259 = math.tanh %258 : vector<2x128xf32>
    %260 = vector.extract_strided_slice %245 {offsets = [0, 384], sizes = [2, 128], strides = [1, 1]} : vector<2x512xf32> to vector<2x128xf32>
    %261 = arith.negf %260 : vector<2x128xf32>
    %262 = math.exp %261 : vector<2x128xf32>
    %cst_84 = arith.constant 1.000000e+00 : f32
    %263 = vector.broadcast %cst_84 : f32 to vector<2x128xf32>
    %264 = arith.addf %263, %262 : vector<2x128xf32>
    %265 = arith.divf %263, %264 : vector<2x128xf32>
    %266 = arith.mulf %257, %239 : vector<2x128xf32>
    %267 = arith.mulf %251, %259 : vector<2x128xf32>
    %268 = arith.addf %266, %267 : vector<2x128xf32>
    %269 = math.tanh %268 : vector<2x128xf32>
    %270 = arith.mulf %265, %269 : vector<2x128xf32>
    %c8 = arith.constant 8 : index
    %c0_85 = arith.constant 0 : index
    %271 = vector.load %arg21[%c8, %c0_85] : memref<16x128xf32, #tpu.memory_space<vmem>>, vector<2x128xf32>
    tpu.vector_store %arg21[%c8, %c0_85], %270 {strides = array<i32>} : memref<16x128xf32, #tpu.memory_space<vmem>>, vector<2x128xf32>,
    %272 = vector.extract_strided_slice %123 {offsets = [10, 0], sizes = [2, 512], strides = [1, 1]} : vector<16x512xf32> to vector<2x512xf32>
    %cst_86 = arith.constant dense<0.000000e+00> : vector<2x512xf32>
    %273 = tpu.matmul %270, %124, %cst_86 {dimension_numbers = #tpu.dot_dimension_numbers<[1], [0], [0], [1], [0, 0, 1, 1], [], []>} : vector<2x128xf32>, vector<128x512xf32>, vector<2x512xf32> -> vector<2x512xf32>
    %274 = arith.addf %272, %273 : vector<2x512xf32>
    %275 = vector.extract_strided_slice %274 {offsets = [0, 0], sizes = [2, 128], strides = [1, 1]} : vector<2x512xf32> to vector<2x128xf32>
    %276 = arith.negf %275 : vector<2x128xf32>
    %277 = math.exp %276 : vector<2x128xf32>
    %cst_87 = arith.constant 1.000000e+00 : f32
    %278 = vector.broadcast %cst_87 : f32 to vector<2x128xf32>
    %279 = arith.addf %278, %277 : vector<2x128xf32>
    %280 = arith.divf %278, %279 : vector<2x128xf32>
    %281 = vector.extract_strided_slice %274 {offsets = [0, 128], sizes = [2, 128], strides = [1, 1]} : vector<2x512xf32> to vector<2x128xf32>
    %282 = arith.negf %281 : vector<2x128xf32>
    %283 = math.exp %282 : vector<2x128xf32>
    %cst_88 = arith.constant 1.000000e+00 : f32
    %284 = vector.broadcast %cst_88 : f32 to vector<2x128xf32>
    %285 = arith.addf %284, %283 : vector<2x128xf32>
    %286 = arith.divf %284, %285 : vector<2x128xf32>
    %287 = vector.extract_strided_slice %274 {offsets = [0, 256], sizes = [2, 128], strides = [1, 1]} : vector<2x512xf32> to vector<2x128xf32>
    %288 = math.tanh %287 : vector<2x128xf32>
    %289 = vector.extract_strided_slice %274 {offsets = [0, 384], sizes = [2, 128], strides = [1, 1]} : vector<2x512xf32> to vector<2x128xf32>
    %290 = arith.negf %289 : vector<2x128xf32>
    %291 = math.exp %290 : vector<2x128xf32>
    %cst_89 = arith.constant 1.000000e+00 : f32
    %292 = vector.broadcast %cst_89 : f32 to vector<2x128xf32>
    %293 = arith.addf %292, %291 : vector<2x128xf32>
    %294 = arith.divf %292, %293 : vector<2x128xf32>
    %295 = arith.mulf %286, %268 : vector<2x128xf32>
    %296 = arith.mulf %280, %288 : vector<2x128xf32>
    %297 = arith.addf %295, %296 : vector<2x128xf32>
    %298 = math.tanh %297 : vector<2x128xf32>
    %299 = arith.mulf %294, %298 : vector<2x128xf32>
    %c10 = arith.constant 10 : index
    %c0_90 = arith.constant 0 : index
    %300 = vector.load %arg21[%c10, %c0_90] : memref<16x128xf32, #tpu.memory_space<vmem>>, vector<2x128xf32>
    tpu.vector_store %arg21[%c10, %c0_90], %299 {strides = array<i32>} : memref<16x128xf32, #tpu.memory_space<vmem>>, vector<2x128xf32>,
    %301 = vector.extract_strided_slice %123 {offsets = [12, 0], sizes = [2, 512], strides = [1, 1]} : vector<16x512xf32> to vector<2x512xf32>
    %cst_91 = arith.constant dense<0.000000e+00> : vector<2x512xf32>
    %302 = tpu.matmul %299, %124, %cst_91 {dimension_numbers = #tpu.dot_dimension_numbers<[1], [0], [0], [1], [0, 0, 1, 1], [], []>} : vector<2x128xf32>, vector<128x512xf32>, vector<2x512xf32> -> vector<2x512xf32>
    %303 = arith.addf %301, %302 : vector<2x512xf32>
    %304 = vector.extract_strided_slice %303 {offsets = [0, 0], sizes = [2, 128], strides = [1, 1]} : vector<2x512xf32> to vector<2x128xf32>
    %305 = arith.negf %304 : vector<2x128xf32>
    %306 = math.exp %305 : vector<2x128xf32>
    %cst_92 = arith.constant 1.000000e+00 : f32
    %307 = vector.broadcast %cst_92 : f32 to vector<2x128xf32>
    %308 = arith.addf %307, %306 : vector<2x128xf32>
    %309 = arith.divf %307, %308 : vector<2x128xf32>
    %310 = vector.extract_strided_slice %303 {offsets = [0, 128], sizes = [2, 128], strides = [1, 1]} : vector<2x512xf32> to vector<2x128xf32>
    %311 = arith.negf %310 : vector<2x128xf32>
    %312 = math.exp %311 : vector<2x128xf32>
    %cst_93 = arith.constant 1.000000e+00 : f32
    %313 = vector.broadcast %cst_93 : f32 to vector<2x128xf32>
    %314 = arith.addf %313, %312 : vector<2x128xf32>
    %315 = arith.divf %313, %314 : vector<2x128xf32>
    %316 = vector.extract_strided_slice %303 {offsets = [0, 256], sizes = [2, 128], strides = [1, 1]} : vector<2x512xf32> to vector<2x128xf32>
    %317 = math.tanh %316 : vector<2x128xf32>
    %318 = vector.extract_strided_slice %303 {offsets = [0, 384], sizes = [2, 128], strides = [1, 1]} : vector<2x512xf32> to vector<2x128xf32>
    %319 = arith.negf %318 : vector<2x128xf32>
    %320 = math.exp %319 : vector<2x128xf32>
    %cst_94 = arith.constant 1.000000e+00 : f32
    %321 = vector.broadcast %cst_94 : f32 to vector<2x128xf32>
    %322 = arith.addf %321, %320 : vector<2x128xf32>
    %323 = arith.divf %321, %322 : vector<2x128xf32>
    %324 = arith.mulf %315, %297 : vector<2x128xf32>
    %325 = arith.mulf %309, %317 : vector<2x128xf32>
    %326 = arith.addf %324, %325 : vector<2x128xf32>
    %327 = math.tanh %326 : vector<2x128xf32>
    %328 = arith.mulf %323, %327 : vector<2x128xf32>
    %c12 = arith.constant 12 : index
    %c0_95 = arith.constant 0 : index
    %329 = vector.load %arg21[%c12, %c0_95] : memref<16x128xf32, #tpu.memory_space<vmem>>, vector<2x128xf32>
    tpu.vector_store %arg21[%c12, %c0_95], %328 {strides = array<i32>} : memref<16x128xf32, #tpu.memory_space<vmem>>, vector<2x128xf32>,
    %330 = vector.extract_strided_slice %123 {offsets = [14, 0], sizes = [2, 512], strides = [1, 1]} : vector<16x512xf32> to vector<2x512xf32>
    %cst_96 = arith.constant dense<0.000000e+00> : vector<2x512xf32>
    %331 = tpu.matmul %328, %124, %cst_96 {dimension_numbers = #tpu.dot_dimension_numbers<[1], [0], [0], [1], [0, 0, 1, 1], [], []>} : vector<2x128xf32>, vector<128x512xf32>, vector<2x512xf32> -> vector<2x512xf32>
    %332 = arith.addf %330, %331 : vector<2x512xf32>
    %333 = vector.extract_strided_slice %332 {offsets = [0, 0], sizes = [2, 128], strides = [1, 1]} : vector<2x512xf32> to vector<2x128xf32>
    %334 = arith.negf %333 : vector<2x128xf32>
    %335 = math.exp %334 : vector<2x128xf32>
    %cst_97 = arith.constant 1.000000e+00 : f32
    %336 = vector.broadcast %cst_97 : f32 to vector<2x128xf32>
    %337 = arith.addf %336, %335 : vector<2x128xf32>
    %338 = arith.divf %336, %337 : vector<2x128xf32>
    %339 = vector.extract_strided_slice %332 {offsets = [0, 128], sizes = [2, 128], strides = [1, 1]} : vector<2x512xf32> to vector<2x128xf32>
    %340 = arith.negf %339 : vector<2x128xf32>
    %341 = math.exp %340 : vector<2x128xf32>
    %cst_98 = arith.constant 1.000000e+00 : f32
    %342 = vector.broadcast %cst_98 : f32 to vector<2x128xf32>
    %343 = arith.addf %342, %341 : vector<2x128xf32>
    %344 = arith.divf %342, %343 : vector<2x128xf32>
    %345 = vector.extract_strided_slice %332 {offsets = [0, 256], sizes = [2, 128], strides = [1, 1]} : vector<2x512xf32> to vector<2x128xf32>
    %346 = math.tanh %345 : vector<2x128xf32>
    %347 = vector.extract_strided_slice %332 {offsets = [0, 384], sizes = [2, 128], strides = [1, 1]} : vector<2x512xf32> to vector<2x128xf32>
    %348 = arith.negf %347 : vector<2x128xf32>
    %349 = math.exp %348 : vector<2x128xf32>
    %cst_99 = arith.constant 1.000000e+00 : f32
    %350 = vector.broadcast %cst_99 : f32 to vector<2x128xf32>
    %351 = arith.addf %350, %349 : vector<2x128xf32>
    %352 = arith.divf %350, %351 : vector<2x128xf32>
    %353 = arith.mulf %344, %326 : vector<2x128xf32>
    %354 = arith.mulf %338, %346 : vector<2x128xf32>
    %355 = arith.addf %353, %354 : vector<2x128xf32>
    %356 = math.tanh %355 : vector<2x128xf32>
    %357 = arith.mulf %352, %356 : vector<2x128xf32>
    %c14 = arith.constant 14 : index
    %c0_100 = arith.constant 0 : index
    %358 = vector.load %arg21[%c14, %c0_100] : memref<16x128xf32, #tpu.memory_space<vmem>>, vector<2x128xf32>
    tpu.vector_store %arg21[%c14, %c0_100], %357 {strides = array<i32>} : memref<16x128xf32, #tpu.memory_space<vmem>>, vector<2x128xf32>,
    %c0_101 = arith.constant 0 : index
    %c0_102 = arith.constant 0 : index
    %359 = vector.load %arg12[%c0_101, %c0_102] : memref<1x128xf32, #tpu.memory_space<vmem>>, vector<1x128xf32>
    %c0_103 = arith.constant 0 : index
    %c0_104 = arith.constant 0 : index
    %360 = vector.load %arg21[%c0_103, %c0_104] : memref<16x128xf32, #tpu.memory_space<vmem>>, vector<16x128xf32>
    %cst_105 = arith.constant dense<0.000000e+00> : vector<1x16xf32>
    %361 = tpu.matmul %359, %360, %cst_105 {dimension_numbers = #tpu.dot_dimension_numbers<[1], [1], [0], [0], [0, 0, 1, 0], [], []>} : vector<1x128xf32>, vector<16x128xf32>, vector<1x16xf32> -> vector<1x16xf32>
    %c0_106 = arith.constant 0 : index
    %c0_107 = arith.constant 0 : index
    %362 = memref.load %arg13[%c0_106, %c0_107] : memref<1x1xf32, #tpu.memory_space<smem>>
    %363 = vector.broadcast %362 : f32 to vector<1x16xf32>
    %364 = arith.addf %361, %363 : vector<1x16xf32>
    %c0_108 = arith.constant 0 : index
    %c0_109 = arith.constant 0 : index
    %365 = vector.load %arg20[%c0_108, %c0_109] : memref<2x16xf32, #tpu.memory_space<vmem>>, vector<1x16xf32>
    tpu.vector_store %arg20[%c0_108, %c0_109], %364 {strides = array<i32>} : memref<2x16xf32, #tpu.memory_space<vmem>>, vector<1x16xf32>,
    %c1 = arith.constant 1 : index
    %c0_110 = arith.constant 0 : index
    %366 = vector.load %arg20[%c1, %c0_110] : memref<2x16xf32, #tpu.memory_space<vmem>>, vector<1x16xf32>
    tpu.vector_store %arg20[%c1, %c0_110], %118 {strides = array<i32>} : memref<2x16xf32, #tpu.memory_space<vmem>>, vector<1x16xf32>,
    return
  }
}

</mosaic_0001>

<bundles_post_ra>
// kernel: squeeze.3
= control target key start
LH: loop header
LB: loop body
LE: loop exit
PB: predicated region body
PF: predicated region fallthrough
CT: control target
= control target key end

     0   :  { %s66_s8 = smov 122   ;;  %vm7_vm0 = vcmask 15360   ;;  %s67_s11 = smov 124   ;;  %s117_s0 = inlined_call_operand.vmem [shape: f32[16], index: 0, kind: input, shape index: {}]   ;;  %s118_s1 = inlined_call_operand.vmem [shape: f32[8,2,1], index: 1, kind: output, shape index: {}]  }
   0x1   :  { %v4_v0 = vld [vmem:[%s117_s0] sm:$0x1]  ;;  %s65_s0 = smov 126   ;;  %s68_s12 = smov 120  }
   0x2   :  { %5 = vst [vmem:[#allocation0] sm:$0x1] %v4_v0  ;;  %s69_s13 = smov 118   ;;  %s70_s14 = smov 116  }
   0x3   :  { %s71_s15 = smov 114  }
   0x9   :  { %v9_v1 = vld [vmem:[#allocation0] sm:$0x1]  }
   0xa   :  { %v21_v2 = vld [vmem:[#allocation0] sm:$0x1]   ;;  %10 = vrot.lane.b32.xlu0 %v9_v1, %s65_s0 }
   0xb   :  { %22 = vrot.lane.b32.xlu1 %v21_v2, %s66_s8  ;;  %v15_v3 = vld [vmem:[#allocation0] sm:$0x1]  }
   0xc   :  { %v27_v4 = vld [vmem:[#allocation0] sm:$0x1]  }
   0xd   :  { %v6_v5 = vld [vmem:[#allocation0] sm:$0x1]  }
   0xe   :  { %8 = vst.msk [vmem:[%s118_s1] sm:$0x1] %vm7_vm0, %v6_v5   ;;  %16 = vrot.lane.b32.xlu0 %v15_v3, %s67_s11  ;;  %v33_v6 = vld [vmem:[#allocation0] sm:$0x1]  }
   0xf   :  { %28 = vrot.lane.b32.xlu1 %v27_v4, %s68_s12  ;;  %v39_v7 = vld [vmem:[#allocation0] sm:$0x1]  }
  0x10   :  { %v45_v8 = vld [vmem:[#allocation0] sm:$0x1]  }
  0x12   :  { %34 = vrot.lane.b32.xlu0 %v33_v6, %s69_s13 }
  0x13   :  { %40 = vrot.lane.b32.xlu1 %v39_v7, %s70_s14 }
  0x16   :  { %46 = vrot.lane.b32.xlu0 %v45_v8, %s71_s15 }
  0x7c   :  { %v11_v9 = vpop.permute.xlu0 %10  }
  0x7d   :  { %v23_v10 = vpop.permute.xlu1 %22   ;;  %51 = vst.msk [vmem:[%s118_s1 + $0x1] sm:$0x1] %vm7_vm0, %v11_v9  }
  0x7e   :  { %53 = vst.msk [vmem:[%s118_s1 + $0x3] sm:$0x1] %vm7_vm0, %v23_v10  }
  0x80   :  { %v17_v11 = vpop.permute.xlu0 %16  }
  0x81   :  { %v29_v12 = vpop.permute.xlu1 %28   ;;  %52 = vst.msk [vmem:[%s118_s1 + $0x2] sm:$0x1] %vm7_vm0, %v17_v11  }
  0x82   :  { %54 = vst.msk [vmem:[%s118_s1 + $0x4] sm:$0x1] %vm7_vm0, %v29_v12  }
  0x84   :  { %v35_v13 = vpop.permute.xlu0 %34  }
  0x85   :  { %v41_v14 = vpop.permute.xlu1 %40   ;;  %55 = vst.msk [vmem:[%s118_s1 + $0x5] sm:$0x1] %vm7_vm0, %v35_v13  }
  0x86   :  { %56 = vst.msk [vmem:[%s118_s1 + $0x6] sm:$0x1] %vm7_vm0, %v41_v14  }
  0x88   :  { %v47_v15 = vpop.permute.xlu0 %46  }
  0x89   :  { %57 = vst.msk [vmem:[%s118_s1 + $0x7] sm:$0x1] %vm7_vm0, %v47_v15  }

// kernel: dann_forward.1
= control target key start
LH: loop header
LB: loop body
LE: loop exit
PB: predicated region body
PF: predicated region fallthrough
CT: control target
= control target key end

     0   :  { %s4304_s0 = inlined_call_operand.vmem [shape: f32[16,4], index: 0, kind: input, shape index: {}]   ;;  %s4305_s1 = inlined_call_operand.vmem [shape: f32[4,128], index: 1, kind: input, shape index: {}]   ;;  %s4306_s2 = inlined_call_operand.vmem [shape: f32[1,128], index: 2, kind: input, shape index: {}]   ;;  %s4307_s3 = inlined_call_operand.vmem [shape: f32[1,128], index: 3, kind: input, shape index: {}]   ;;  %s4308_s4 = inlined_call_operand.vmem [shape: f32[1,128], index: 4, kind: input, shape index: {}]   ;;  %s4309_s5 = inlined_call_operand.hbm [shape: f32[128,128], index: 5, kind: input, shape index: {}]   ;;  %s4310_s6 = inlined_call_operand.vmem [shape: f32[1,128], index: 6, kind: input, shape index: {}]   ;;  %s4311_s7 = inlined_call_operand.vmem [shape: f32[1,128], index: 7, kind: input, shape index: {}]   ;;  %s4312_s8 = inlined_call_operand.vmem [shape: f32[1,128], index: 8, kind: input, shape index: {}]   ;;  %s4313_s9 = inlined_call_operand.hbm [shape: f32[128,512], index: 9, kind: input, shape index: {}]   ;;  %s4314_s10 = inlined_call_operand.hbm [shape: f32[128,512], index: 10, kind: input, shape index: {}]   ;;  %s4315_s11 = inlined_call_operand.vmem [shape: f32[1,512], index: 11, kind: input, shape index: {}]   ;;  %s4316_s12 = inlined_call_operand.vmem [shape: f32[1,128], index: 12, kind: input, shape index: {}]   ;;  %s4317_s13 = inlined_call_operand.<no memory space> [shape: f32[1,1], index: 13, kind: input, shape index: {}]   ;;  %s4318_s14 = inlined_call_operand.hbm [shape: f32[128,128], index: 14, kind: input, shape index: {}]   ;;  %s4319_s15 = inlined_call_operand.vmem [shape: f32[1,128], index: 15, kind: input, shape index: {}]   ;;  %s4320_s16 = inlined_call_operand.vmem [shape: f32[1,128], index: 16, kind: input, shape index: {}]   ;;  %s4321_s17 = inlined_call_operand.vmem [shape: f32[1,128], index: 17, kind: input, shape index: {}]   ;;  %s4322_s18 = inlined_call_operand.vmem [shape: f32[1,128], index: 18, kind: input, shape index: {}]   ;;  %s4323_s19 = inlined_call_operand.<no memory space> [shape: f32[1,1], index: 19, kind: input, shape index: {}]   ;;  %s4324_s20 = inlined_call_operand.vmem [shape: f32[2,16], index: 20, kind: output, shape index: {}]  }
   0x1   :  { %4328 = sst [smem:[#allocation15_spill]] %s4304_s0 }
   0x2   :  { %4329 = sst [smem:[#allocation16_spill]] %s4305_s1 }
   0x3   :  { %4330 = sst [smem:[#allocation17_spill]] %s4306_s2 }
   0x4   :  { %4331 = sst [smem:[#allocation18_spill]] %s4307_s3 }
   0x5   :  { %4332 = sst [smem:[#allocation19_spill]] %s4308_s4 }
   0x6   :  { %27 = vsyncpa [#allocation6], 0 }
   0x7   :  { %28 = vsyncpa [#allocation8], 0 }
   0x8   :  { %29 = vsyncpa [#allocation11], 0  ;;  %s3590_s1 = smov [#allocation7]   ;;  %s3496_s2 = scalar_lea.hbm %s4313_s9, 8192 }
   0x9   :  { %s63_s22 = sshll.u32 %s3590_s1, 4  ;;  %p3497_p0 = scmp.ne.s32.totalorder %s4313_s9, %s3496_s2  ;;  %s64_s22 = int_to_ptr.vmem [resolvable:$true] %s63_s22 }
   0xa   :  { %p3500_p1 = scmp.lt.u32.totalorder %s3496_s2, %s4313_s9 }
   0xc   :  { %p3502_p2 = pnand %p3500_p1, %p3497_p0 }
   0xe   :  { %3505 = shalt.err (!%p3502_p2)
}
   0xf   :  { %s3506_s28 = scalar_lea.vmem %s64_s22, 8192  ;;  %p3511_p4 = scmp.lt.s32.totalorder %s64_s22, %s64_s22 }
  0x10   :  { %p3507_p3 = scmp.ne.s32.totalorder %s64_s22, %s3506_s28  ;;  %p3512_p5 = scmp.lt.s32.totalorder %s3506_s28, %s3506_s28 }
  0x12   :  { %p3513_p6 = por %p3512_p5, %p3511_p4 }
  0x14   :  { %p3514_p7 = pnand %p3513_p6, %p3507_p3 }
  0x16   :  { %3517 = shalt.err (!%p3514_p7)
}
  0x17   :  { %s4326_s4 = smov 512   ;;  %s4327_s29 = smov 32  }
  0x18   :  { %69 = dma.hbm_to_vmem [thread:$0]  %s4313_s9, 8192, %s64_s22, [#allocation8], %s4326_s4, %s4326_s4, %s4327_s29  }
  0x19   :  { %s3593_s21 = smov [#allocation5]   ;;  %s3518_s2 = scalar_lea.hbm %s4309_s5, 2048 }
  0x1a   :  { %s45_s1 = sshll.u32 %s3593_s21, 4  ;;  %p3519_p8 = scmp.ne.s32.totalorder %s4309_s5, %s3518_s2  ;;  %s46_s1 = int_to_ptr.vmem [resolvable:$true] %s45_s1 }
  0x1b   :  { %p3522_p9 = scmp.lt.u32.totalorder %s3518_s2, %s4309_s5 }
  0x1d   :  { %p3524_p10 = pnand %p3522_p9, %p3519_p8 }
  0x1f   :  { %3527 = shalt.err (!%p3524_p10)
}
  0x20   :  { %s3528_s28 = scalar_lea.vmem %s46_s1, 2048  ;;  %p3533_p12 = scmp.lt.s32.totalorder %s46_s1, %s46_s1 }
  0x21   :  { %p3529_p11 = scmp.ne.s32.totalorder %s46_s1, %s3528_s28  ;;  %p3534_p13 = scmp.lt.s32.totalorder %s3528_s28, %s3528_s28 }
  0x23   :  { %p3535_p0 = por %p3534_p13, %p3533_p12 }
  0x25   :  { %p3536_p1 = pnand %p3535_p0, %p3529_p11 }
  0x27   :  { %3539 = shalt.err (!%p3536_p1)
}
  0x28   :  { %s3594_s9 = smov 128   ;;  %s3595_s22 = smov 8  }
  0x29   :  { %51 = dma.hbm_to_vmem [thread:$0]  %s4309_s5, 2048, %s46_s1, [#allocation6], %s3594_s9, %s3594_s9, %s3595_s22  }
  0x2a   :  { %s3596_s21 = smov [#allocation9]   ;;  %s3597_s24 = smov [#allocation10]  }
  0x2b   :  { %s75_s23 = sshll.u32 %s3596_s21, 4  ;;  %s93_s2 = sshll.u32 %s3597_s24, 4  ;;  %s76_s23 = int_to_ptr.vmem [resolvable:$true] %s75_s23  ;;  %s3736_s2 = int_to_ptr.vmem [resolvable:$true] %s93_s2 }
  0x2c   :  { %s3540_s26 = scalar_lea.hbm %s4314_s10, 8192 }
  0x2d   :  { %p3541_p2 = scmp.ne.s32.totalorder %s4314_s10, %s3540_s26  ;;  %p3544_p3 = scmp.lt.u32.totalorder %s3540_s26, %s4314_s10 }
  0x2f   :  { %p3546_p4 = pnand %p3544_p3, %p3541_p2 }
  0x31   :  { %3549 = shalt.err (!%p3546_p4)
}
  0x32   :  { %s3550_s5 = scalar_lea.vmem %s76_s23, 8192  ;;  %p3555_p6 = scmp.lt.s32.totalorder %s76_s23, %s76_s23 }
  0x33   :  { %p3551_p5 = scmp.ne.s32.totalorder %s76_s23, %s3550_s5  ;;  %p3556_p7 = scmp.lt.s32.totalorder %s3550_s5, %s3550_s5 }
  0x35   :  { %p3557_p8 = por %p3556_p7, %p3555_p6 }
  0x37   :  { %p3558_p9 = pnand %p3557_p8, %p3551_p5 }
  0x39   :  { %3561 = shalt.err (!%p3558_p9)
}
  0x3a   :  { %s4333_s1 = smov 32   ;;  %s4334_s30 = smov 512  }
  0x3b   :  { %81 = dma.hbm_to_vmem [thread:$0]  %s4314_s10, 8192, %s76_s23, [#allocation8], %s4334_s30, %s4334_s30, %s4333_s1  }
  0x3c   :  { %s3562_s4 = scalar_lea.hbm %s4318_s14, 2048 }
  0x3d   :  { %p3563_p10 = scmp.ne.s32.totalorder %s4318_s14, %s3562_s4  ;;  %p3566_p11 = scmp.lt.u32.totalorder %s3562_s4, %s4318_s14 }
  0x3f   :  { %p3568_p12 = pnand %p3566_p11, %p3563_p10 }
  0x41   :  { %3571 = shalt.err (!%p3568_p12)
}
  0x42   :  { %s3572_s28 = scalar_lea.vmem %s3736_s2, 2048  ;;  %p3577_p0 = scmp.lt.s32.totalorder %s3736_s2, %s3736_s2 }
  0x43   :  { %p3573_p13 = scmp.ne.s32.totalorder %s3736_s2, %s3572_s28  ;;  %p3578_p1 = scmp.lt.s32.totalorder %s3572_s28, %s3572_s28 }
  0x45   :  { %p3579_p2 = por %p3578_p1, %p3577_p0 }
  0x47   :  { %p3580_p3 = pnand %p3579_p2, %p3573_p13 }
  0x49   :  { %3583 = shalt.err (!%p3580_p3)
}
  0x4a   :  { %99 = dma.hbm_to_vmem [thread:$0]  %s4318_s14, 2048, %s3736_s2, [#allocation11], %s3594_s9, %s3594_s9, %s3595_s22  }
  0x4b   :  { %3584 = dma.done.wait [#allocation6], 2048  }
  0x4c   :  { %3585 = vsyncadd [#allocation6], 4294965248 }
  0x4d   :  { %3586 = dma.done.wait [#allocation8], 16384  }
  0x4e   :  { %3587 = vsyncadd [#allocation8], 4294950912 }
  0x4f   :  { %3588 = dma.done.wait [#allocation11], 2048  }
  0x50   :  { %3589 = vsyncadd [#allocation11], 4294965248  ;;  %vm139_vm0 = vcmask 1043456   ;;  %vm132_vm1 = vcmask 31744   ;;  %s4335_s30 = sld [smem:[#allocation16_spill]]  ;;  %s4336_s24 = sld [smem:[#allocation15_spill]]  ;;  %v226_v14 = vlaneseq }
  0x51   :  { %s4337_s22 = sld [smem:[#allocation17_spill]]  ;;  %v267_v8 = vld [vmem:[#allocation5] sm:$0xff]  ;;  %v268_v9 = vld [vmem:[#allocation5 + $0x8] sm:$0xff]  ;;  %v269_v10 = vld [vmem:[#allocation5 + $0x10] sm:$0xff]  ;;  %v3598_v18 = vmov 0.0   ;;  %s4338_s3 = sld [smem:[#allocation18_spill]] }
  0x52   :  { %v2687_v11 = vpack.c.bf16 %v268_v9, %v267_v8  ;;  %v270_v12 = vld [vmem:[#allocation5 + $0x18] sm:$0xff]  ;;  %v3786_v15 = vand.u32 127, %v226_v14  ;;  %v271_v28 = vld [vmem:[#allocation5 + $0x20] sm:$0xff]  ;;  %v272_v29 = vld [vmem:[#allocation5 + $0x28] sm:$0xff]  ;;  %s4339_s28 = sld [smem:[#allocation19_spill]]  ;;  %vm3600_vm5 = vmmov 0  }
  0x53   :  { %v2691_v13 = vpack.c.bf16 %v270_v12, %v269_v10  ;;  %v2695_v30 = vpack.c.bf16 %v272_v29, %v271_v28  ;;  %v273_v31 = vld [vmem:[#allocation5 + $0x30] sm:$0xff]  ;;  %v274_v32 = vld [vmem:[#allocation5 + $0x38] sm:$0xff]  ;;  %v275_v34 = vld [vmem:[#allocation5 + $0x40] sm:$0xff]  ;;  %vm2501_vm6 = vcmask 122880  }
  0x54   :  { %2688 = vmatprep.subr.bf16.mxu1 %v2687_v11  ;;  %vm228_vm2 = vcmp.lt.s32.totalorder %v3786_v15, 64  ;;  %v2699_v33 = vpack.c.bf16 %v274_v32, %v273_v31  ;;  %v276_v35 = vld [vmem:[#allocation5 + $0x48] sm:$0xff]  ;;  %v277_v36 = vld [vmem:[#allocation5 + $0x50] sm:$0xff]  ;;  %v278_v38 = vld [vmem:[#allocation5 + $0x58] sm:$0xff]  ;;  %vm373_vm3 = vcmp.lt.s32.totalorder %v3786_v15, 50  ;;  %vm528_vm4 = vcmp.lt.s32.totalorder %v3786_v15, 100 }
  0x55   :  { %2690 = vmatpush3.bf16.msra.mxu1 %v2687_v11  ;;  %v2515_v19 = vsel %vm228_vm2, 1.0, %v3598_v18  ;;  %v2703_v37 = vpack.c.bf16 %v276_v35, %v275_v34  ;;  %v2707_v39 = vpack.c.bf16 %v278_v38, %v277_v36  ;;  %v279_v40 = vld [vmem:[#allocation5 + $0x60] sm:$0xff]  ;;  %v280_v41 = vld [vmem:[#allocation5 + $0x68] sm:$0xff]  ;;  %v281_v43 = vld [vmem:[#allocation5 + $0x70] sm:$0xff]  ;;  %v2519_v9 = vsel %vm373_vm3, 1.0, %v3598_v18 }
  0x56   :  { %v124_v0 = vld [vmem:[%s4335_s30] sm:$0xf]  ;;  %v123_v2 = vld [vmem:[%s4336_s24 + $0x8] sm:$0xff]  ;;  %2692 = vmatprep.subr.bf16.mxu1 %v2691_v13  ;;  %v2711_v42 = vpack.c.bf16 %v280_v41, %v279_v40  ;;  %v430_v31 = vld [vmem:[#allocation10 + $0x40] sm:$0xff] }
  0x57   :  { %v122_v1 = vld [vmem:[%s4336_s24] sm:$0xff]  ;;  %2598 = vmatprep.subr.msk.mxu0 %vm139_vm0, %v124_v0  ;;  %v282_v44 = vld [vmem:[#allocation5 + $0x78] sm:$0xff]  ;;  %v431_v32 = vld [vmem:[#allocation10 + $0x48] sm:$0xff] }
  0x58   :  { %2600 = vmatprep.mubr.msk.f32.mxu0 %vm132_vm1, %v122_v1  ;;  %2599 = vmatpush3.msk.msra.mxu0 %vm139_vm0, %v124_v0  ;;  %v2511_v3 = vld [vmem:[%s4337_s22] ss:$0 sm:$0xff]  ;;  %v2715_v45 = vpack.c.bf16 %v282_v44, %v281_v43  ;;  %v429_v29 = vld [vmem:[#allocation10 + $0x38] sm:$0xff]  ;;  %v435_v38 = vld [vmem:[#allocation10 + $0x68] sm:$0xff] }
  0x59   :  { %2601 = vmatmul.mubr.msk.f32.vlgmr.msra.gmra.mrb[0].mxu0 %vm132_vm1, %v123_v2  ;;  %2694 = vmatpush3.bf16.msra.mxu1 %v2691_v13  ;;  %v2516_v53 = vld [vmem:[%s4338_s3] ss:$0 sm:$0xff]  ;;  %v433_v35 = vld [vmem:[#allocation10 + $0x58] sm:$0xff]  ;;  %v647_v43 = vld [vmem:[#allocation7 + $0x8] sm:$0xff] }
  0x5a   :  { %2696 = vmatprep.subr.bf16.mxu1 %v2695_v30  ;;  %v2517_v55 = vld [vmem:[%s4339_s28] ss:$0 sm:$0xff]  ;;  %v437_v41 = vld [vmem:[#allocation10 + $0x78] sm:$0xff]  ;;  %v651_v44 = vld [vmem:[#allocation7 + $0x28] sm:$0xff] }
  0x5b   :  { %v2518_v0 = vld [vmem:[%s4310_s6] ss:$0 sm:$0xff] }
  0x5c   :  { %v428_v28 = vld [vmem:[#allocation10 + $0x30] sm:$0xff] }
  0x5d   :  { %2698 = vmatpush3.bf16.msra.mxu1 %v2695_v30  ;;  %v2731_v30 = vpack.c.bf16 %v429_v29, %v428_v28  ;;  %v432_v34 = vld [vmem:[#allocation10 + $0x50] sm:$0xff]  ;;  %v674_v28 = vld [vmem:[#allocation7 + $0xe0] sm:$0xff]  ;;  %v679_v29 = vld [vmem:[#allocation7 + $0x108] sm:$0xff] }
  0x5e   :  { %2700 = vmatprep.subr.bf16.mxu1 %v2699_v33  ;;  %v2739_v36 = vpack.c.bf16 %v433_v35, %v432_v34  ;;  %v682_v34 = vld [vmem:[#allocation7 + $0x120] sm:$0xff]  ;;  %v687_v35 = vld [vmem:[#allocation7 + $0x148] sm:$0xff] }
  0x61   :  { %2702 = vmatpush3.bf16.msra.mxu1 %v2699_v33  ;;  %v2735_v33 = vpack.c.bf16 %v431_v32, %v430_v31 }
  0x62   :  { %2704 = vmatprep.subr.bf16.mxu1 %v2703_v37 }
  0x65   :  { %2706 = vmatpush3.bf16.msra.mxu1 %v2703_v37  ;;  %v434_v37 = vld [vmem:[#allocation10 + $0x60] sm:$0xff] }
  0x66   :  { %2708 = vmatprep.subr.bf16.mxu1 %v2707_v39  ;;  %v2743_v40 = vpack.c.bf16 %v435_v38, %v434_v37 }
  0x69   :  { %2710 = vmatpush3.bf16.msra.mxu1 %v2707_v39  ;;  %v436_v39 = vld [vmem:[#allocation10 + $0x70] sm:$0xff] }
  0x6a   :  { %2712 = vmatprep.subr.bf16.mxu1 %v2711_v42 }
  0x6d   :  { %2714 = vmatpush3.bf16.msra.mxu1 %v2711_v42  ;;  %v2747_v42 = vpack.c.bf16 %v437_v41, %v436_v39  ;;  %v686_v39 = vld [vmem:[#allocation7 + $0x140] sm:$0xff]  ;;  %v695_v41 = vld [vmem:[#allocation7 + $0x188] sm:$0xff] }
  0x6e   :  { %2716 = vmatprep.subr.bf16.mxu1 %v2715_v45 }
  0x71   :  { %2718 = vmatpush3.bf16.msra.mxu1 %v2715_v45  ;;  %v2754_v45 = vpack.c.bf16 %v651_v44, %v647_v43 }
 0x12c   :  { %v2602_v4 = vpop.f32.mrb[0].mxu0 }
 0x12d   :  { %v209_v5 = vpop.f32.mrb[1].mxu0  ;;  %v215_v7 = vadd.f32 %v2602_v4, %v2511_v3 }
 0x12e   :  { %v210_v6 = vadd.f32 %v2511_v3, %v209_v5 }
 0x130   :  { %220 = vadd.xlane.f32.xlu0 %v210_v6 }
 0x134   :  { %222 = vadd.xlane.f32.xlu0 %v215_v7 }
 0x1bd   :  { %v221_v16 = vpop.xlane.xlu0 %220 }
 0x1be   :  { %v224_v17 = vmul.f32 0.015625, %v221_v16 }
 0x1c0   :  { %v231_v20 = vsub.f32 %v210_v6, %v224_v17 }
 0x1c1   :  { %v223_v21 = vpop.xlane.xlu0 %222 }
 0x1c2   :  { %v225_v22 = vmul.f32 0.015625, %v223_v21  ;;  %v233_v23 = vmul.f32 %v2515_v19, %v231_v20  ;;  %v423_v20 = vld [vmem:[#allocation10 + $0x8] sm:$0xff] }
 0x1c4   :  { %v232_v24 = vsub.f32 %v215_v7, %v225_v22  ;;  %v235_v25 = vmul.f32 %v233_v23, %v233_v23  ;;  %v424_v22 = vld [vmem:[#allocation10 + $0x10] sm:$0xff] }
 0x1c6   :  { %237 = vadd.xlane.f32.xlu1 %v235_v25  ;;  %v234_v26 = vmul.f32 %v2515_v19, %v232_v24  ;;  %v422_v19 = vld [vmem:[#allocation10] sm:$0xff] }
 0x1c7   :  { %v2719_v21 = vpack.c.bf16 %v423_v20, %v422_v19  ;;  %v426_v25 = vld [vmem:[#allocation10 + $0x20] sm:$0xff] }
 0x1c8   :  { %v236_v27 = vmul.f32 %v234_v26, %v234_v26 }
 0x1c9   :  { %2720 = vmatprep.subr.bf16.mxu0 %v2719_v21 }
 0x1ca   :  { %239 = vadd.xlane.f32.xlu1 %v236_v27  ;;  %2722 = vmatpush3.bf16.msra.mxu0 %v2719_v21  ;;  %v662_v21 = vld [vmem:[#allocation7 + $0x80] sm:$0xff] }
 0x253   :  { %v238_v46 = vpop.xlane.xlu1 %237 }
 0x254   :  { %v241_v47 = vmul.f32 0.015625, %v238_v46 }
 0x256   :  { %v243_v48 = vadd.f32 1e-05, %v241_v47 }
 0x257   :  { %v240_v49 = vpop.xlane.xlu1 %239 }
 0x258   :  { %3344 = vrsqrt.f32 %v243_v48  ;;  %v242_v50 = vmul.f32 0.015625, %v240_v49 }
 0x25a   :  { %v244_v51 = vadd.f32 1e-05, %v242_v50 }
 0x25c   :  { %3346 = vrsqrt.f32 %v244_v51 }
 0x262   :  { %v3345_v52 = vpop.eup %3344 }
 0x263   :  { %v247_v54 = vmul.f32 %v3345_v52, %v233_v23  ;;  %v425_v23 = vld [vmem:[#allocation10 + $0x18] sm:$0xff] }
 0x264   :  { %v2723_v24 = vpack.c.bf16 %v425_v23, %v424_v22  ;;  %v666_v22 = vld [vmem:[#allocation7 + $0xa0] sm:$0xff]  ;;  %v671_v23 = vld [vmem:[#allocation7 + $0xc8] sm:$0xff] }
 0x265   :  { %v255_v56 = vmul.f32 %v2516_v53, %v247_v54 }
 0x266   :  { %v3347_v57 = vpop.eup %3346  ;;  %2724 = vmatprep.subr.bf16.mxu0 %v2723_v24 }
 0x267   :  { %v248_v58 = vmul.f32 %v3347_v57, %v234_v26  ;;  %v263_v59 = vadd.f32 %v2517_v55, %v255_v56  ;;  %2726 = vmatpush3.bf16.msra.mxu0 %v2723_v24  ;;  %v427_v26 = vld [vmem:[#allocation10 + $0x28] sm:$0xff]  ;;  %v2521_v56 = vld [vmem:[%s4312_s8] ss:$0 sm:$0xff] }
 0x268   :  { %v2727_v27 = vpack.c.bf16 %v427_v26, %v426_v25  ;;  %v675_v24 = vld [vmem:[#allocation7 + $0xe8] sm:$0xff]  ;;  %v2764_v25 = vpack.c.bf16 %v666_v22, %v662_v21  ;;  %v918_v22 = vld [vmem:[#allocation9 + $0x100] sm:$0xff] }
 0x269   :  { %v256_v60 = vmul.f32 %v2516_v53, %v248_v58  ;;  %v265_v61 = vmax.f32 %v263_v59, 0.0  ;;  %v2520_v53 = vld [vmem:[%s4311_s7] ss:$0 sm:$0xff]  ;;  %v2766_v26 = vpack.c.bf16 %v675_v24, %v671_v23  ;;  %v922_v23 = vld [vmem:[#allocation9 + $0x120] sm:$0xff]  ;;  %v927_v24 = vld [vmem:[#allocation9 + $0x148] sm:$0xff] }
 0x26a   :  { %2728 = vmatprep.subr.bf16.mxu0 %v2727_v27 }
 0x26b   :  { %v264_v62 = vadd.f32 %v2517_v55, %v256_v60  ;;  %2635 = vmatprep.mubr.f32.mxu1 %v265_v61  ;;  %2730 = vmatpush3.bf16.msra.mxu0 %v2727_v27  ;;  %v670_v27 = vld [vmem:[#allocation7 + $0xc0] sm:$0xff] }
 0x26c   :  { %2732 = vmatprep.subr.bf16.mxu0 %v2731_v30  ;;  %v2768_v31 = vpack.c.bf16 %v674_v28, %v670_v27  ;;  %v926_v28 = vld [vmem:[#allocation9 + $0x140] sm:$0xff] }
 0x26d   :  { %v266_v63 = vmax.f32 %v264_v62, 0.0 }
 0x26f   :  { %2636 = vmatmul.mubr.f32.vlgmr.msra.gmra.mrb[0].mxu1 %v266_v63  ;;  %2734 = vmatpush3.bf16.msra.mxu0 %v2731_v30  ;;  %v683_v30 = vld [vmem:[#allocation7 + $0x128] sm:$0xff] }
 0x270   :  { %2736 = vmatprep.subr.bf16.mxu0 %v2735_v33  ;;  %v2770_v32 = vpack.c.bf16 %v683_v30, %v679_v29  ;;  %v930_v29 = vld [vmem:[#allocation9 + $0x160] sm:$0xff]  ;;  %v935_v30 = vld [vmem:[#allocation9 + $0x188] sm:$0xff]  ;;  %2677 = vmatprep.mubr.msk.f32.mxu1 %vm3600_vm5, %v3598_v18 }
 0x273   :  { %2738 = vmatpush3.bf16.msra.mxu0 %v2735_v33  ;;  %v678_v33 = vld [vmem:[#allocation7 + $0x100] sm:$0xff] }
 0x274   :  { %2740 = vmatprep.subr.bf16.mxu0 %v2739_v36  ;;  %v2772_v37 = vpack.c.bf16 %v682_v34, %v678_v33  ;;  %v934_v34 = vld [vmem:[#allocation9 + $0x180] sm:$0xff] }
 0x277   :  { %2742 = vmatpush3.bf16.msra.mxu0 %v2739_v36  ;;  %v691_v36 = vld [vmem:[#allocation7 + $0x168] sm:$0xff] }
 0x278   :  { %2744 = vmatprep.subr.bf16.mxu0 %v2743_v40  ;;  %v2774_v38 = vpack.c.bf16 %v691_v36, %v687_v35  ;;  %v938_v35 = vld [vmem:[#allocation9 + $0x1a0] sm:$0xff]  ;;  %v943_v36 = vld [vmem:[#allocation9 + $0x1c8] sm:$0xff] }
 0x27b   :  { %2746 = vmatpush3.bf16.msra.mxu0 %v2743_v40  ;;  %v690_v40 = vld [vmem:[#allocation7 + $0x160] sm:$0xff] }
 0x27c   :  { %2748 = vmatprep.subr.bf16.mxu0 %v2747_v42  ;;  %v2776_v43 = vpack.c.bf16 %v690_v40, %v686_v39  ;;  %v942_v40 = vld [vmem:[#allocation9 + $0x1c0] sm:$0xff] }
 0x27f   :  { %2750 = vmatpush3.bf16.msra.mxu0 %v2747_v42  ;;  %v699_v42 = vld [vmem:[#allocation7 + $0x1a8] sm:$0xff] }
 0x280   :  { %2755 = vmatprep.subr.bf16.mxu0 %v2754_v45  ;;  %v2778_v44 = vpack.c.bf16 %v699_v42, %v695_v41  ;;  %v694_v45 = vld [vmem:[#allocation7 + $0x180] sm:$0xff] }
 0x281   :  { %v946_v41 = vld [vmem:[#allocation9 + $0x1e0] sm:$0xff] }
 0x282   :  { %v3862_v42 = vpack.c.bf16 %v946_v41, %v942_v40 }
 0x342   :  { %v2637_v1 = vpop.f32.mrb[0].mxu1 }
 0x343   :  { %v362_v2 = vadd.f32 %v2637_v1, %v2518_v0  ;;  %v356_v3 = vpop.f32.mrb[1].mxu1 }
 0x344   :  { %v357_v4 = vadd.f32 %v2518_v0, %v356_v3 }
 0x345   :  { %369 = vadd.xlane.f32.xlu1 %v362_v2 }
 0x346   :  { %367 = vadd.xlane.f32.xlu0 %v357_v4 }
 0x3d2   :  { %v370_v5 = vpop.xlane.xlu1 %369 }
 0x3d3   :  { %v372_v6 = vmul.f32 0.02, %v370_v5  ;;  %v368_v7 = vpop.xlane.xlu0 %367  ;;  %v650_v5 = vld [vmem:[#allocation7 + $0x20] sm:$0xff] }
 0x3d4   :  { %v371_v8 = vmul.f32 0.02, %v368_v7  ;;  %v659_v7 = vld [vmem:[#allocation7 + $0x68] sm:$0xff] }
 0x3d5   :  { %v377_v10 = vsub.f32 %v362_v2, %v372_v6  ;;  %v655_v6 = vld [vmem:[#allocation7 + $0x48] sm:$0xff] }
 0x3d6   :  { %v376_v11 = vsub.f32 %v357_v4, %v371_v8  ;;  %v646_v4 = vld [vmem:[#allocation7] sm:$0xff] }
 0x3d7   :  { %v379_v12 = vmul.f32 %v2519_v9, %v377_v10  ;;  %v2756_v8 = vpack.c.bf16 %v650_v5, %v646_v4  ;;  %v2758_v10 = vpack.c.bf16 %v659_v7, %v655_v6  ;;  %v902_v5 = vld [vmem:[#allocation9 + $0x80] sm:$0xff]  ;;  %v911_v7 = vld [vmem:[#allocation9 + $0xc8] sm:$0xff] }
 0x3d8   :  { %v378_v13 = vmul.f32 %v2519_v9, %v376_v11  ;;  %v654_v11 = vld [vmem:[#allocation7 + $0x40] sm:$0xff] }
 0x3d9   :  { %v381_v16 = vmul.f32 %v379_v12, %v379_v12  ;;  %v906_v6 = vld [vmem:[#allocation9 + $0xa0] sm:$0xff] }
 0x3da   :  { %v380_v17 = vmul.f32 %v378_v13, %v378_v13 }
 0x3db   :  { %384 = vadd.xlane.f32.xlu1 %v381_v16  ;;  %v663_v16 = vld [vmem:[#allocation7 + $0x88] sm:$0xff] }
 0x3dc   :  { %382 = vadd.xlane.f32.xlu0 %v380_v17  ;;  %v667_v17 = vld [vmem:[#allocation7 + $0xa8] sm:$0xff] }
 0x3dd   :  { %v2762_v20 = vpack.c.bf16 %v667_v17, %v663_v16  ;;  %v914_v16 = vld [vmem:[#allocation9 + $0xe0] sm:$0xff]  ;;  %v919_v17 = vld [vmem:[#allocation9 + $0x108] sm:$0xff] }
 0x468   :  { %v385_v46 = vpop.xlane.xlu1 %384 }
 0x469   :  { %v387_v47 = vmul.f32 0.02, %v385_v46  ;;  %v383_v48 = vpop.xlane.xlu0 %382  ;;  %v698_v46 = vld [vmem:[#allocation7 + $0x1a0] sm:$0xff] }
 0x46a   :  { %v386_v49 = vmul.f32 0.02, %v383_v48  ;;  %v707_v48 = vld [vmem:[#allocation7 + $0x1e8] sm:$0xff] }
 0x46b   :  { %v389_v50 = vadd.f32 1e-05, %v387_v47  ;;  %v703_v47 = vld [vmem:[#allocation7 + $0x1c8] sm:$0xff] }
 0x46c   :  { %v388_v51 = vadd.f32 1e-05, %v386_v49  ;;  %v2780_v49 = vpack.c.bf16 %v698_v46, %v694_v45 }
 0x46d   :  { %3348 = vrsqrt.f32 %v389_v50  ;;  %v2782_v50 = vpack.c.bf16 %v707_v48, %v703_v47  ;;  %v3889_v48 = vshrl.u32 %v226_v14, 7 }
 0x46e   :  { %3350 = vrsqrt.f32 %v388_v51  ;;  %v702_v51 = vld [vmem:[#allocation7 + $0x1c0] sm:$0xff] }
 0x477   :  { %v3349_v52 = vpop.eup %3348 }
 0x478   :  { %v3351_v54 = vpop.eup %3350  ;;  %v393_v55 = vmul.f32 %v3349_v52, %v379_v12  ;;  %v658_v12 = vld [vmem:[#allocation7 + $0x60] sm:$0xff] }
 0x479   :  { %v392_v57 = vmul.f32 %v3351_v54, %v378_v13  ;;  %v2760_v19 = vpack.c.bf16 %v658_v12, %v654_v11  ;;  %v706_v52 = vld [vmem:[#allocation7 + $0x1e0] sm:$0xff]  ;;  %v891_v54 = vld [vmem:[#allocation9 + $0x28] sm:$0xff] }
 0x47a   :  { %v401_v58 = vmul.f32 %v2520_v53, %v393_v55  ;;  %v2784_v55 = vpack.c.bf16 %v706_v52, %v702_v51  ;;  %v910_v12 = vld [vmem:[#allocation9 + $0xc0] sm:$0xff]  ;;  %v718_v52 = vsub.s32 1, %v3889_v48 }
 0x47b   :  { %v400_v59 = vmul.f32 %v2520_v53, %v392_v57  ;;  %v887_v53 = vld [vmem:[#allocation9 + $0x8] sm:$0xff]  ;;  %v886_v57 = vld [vmem:[#allocation9] sm:$0xff] }
 0x47c   :  { %v409_v60 = vadd.f32 %v2521_v56, %v401_v58  ;;  %v890_v58 = vld [vmem:[#allocation9 + $0x20] sm:$0xff] }
 0x47d   :  { %v408_v61 = vadd.f32 %v2521_v56, %v400_v59  ;;  %v3814_v56 = vpack.c.bf16 %v891_v54, %v887_v53  ;;  %v895_v59 = vld [vmem:[#allocation9 + $0x48] sm:$0xff] }
 0x47e   :  { %v2523_v62 = vmul.f32 -1.442695, %v409_v60  ;;  %v899_v60 = vld [vmem:[#allocation9 + $0x68] sm:$0xff] }
 0x47f   :  { %v2522_v63 = vmul.f32 -1.442695, %v408_v61  ;;  %v3816_v61 = vpack.c.bf16 %v890_v58, %v886_v57 }
 0x480   :  { %3352 = vpow2.f32 %v2523_v62  ;;  %v3819_v62 = vpack.c.bf16 %v899_v60, %v895_v59 }
 0x481   :  { %3354 = vpow2.f32 %v2522_v63  ;;  %v894_v63 = vld [vmem:[#allocation9 + $0x40] sm:$0xff] }
 0x48a   :  { %v3353_v0 = vpop.eup %3352 }
 0x48b   :  { %v3355_v1 = vpop.eup %3354  ;;  %v417_v2 = vadd.f32 1.0, %v3353_v0  ;;  %v898_v0 = vld [vmem:[#allocation9 + $0x60] sm:$0xff] }
 0x48c   :  { %v416_v3 = vadd.f32 1.0, %v3355_v1  ;;  %v903_v1 = vld [vmem:[#allocation9 + $0x88] sm:$0xff] }
 0x48e   :  { %3356 = vrcp.f32 %v416_v3  ;;  %v3824_v3 = vpack.c.bf16 %v898_v0, %v894_v63 }
 0x48f   :  { %3358 = vrcp.f32 %v417_v2  ;;  %v907_v2 = vld [vmem:[#allocation9 + $0xa8] sm:$0xff] }
 0x490   :  { %v3827_v4 = vpack.c.bf16 %v907_v2, %v903_v1 }
 0x498   :  { %v3807_v9 = vpop.eup %3356 }
 0x499   :  { %v3809_v13 = vpop.eup %3358  ;;  %2670 = vmatprep.mubr.f32.mxu0 %v3807_v9 }
 0x49a   :  { %2671 = vmatmul.mubr.f32.vlgmr.msra.gmra.mrb[2].mxu0 %v3809_v13 }
 0x49b   :  { %2757 = vmatpush1.bf16.msra.mxu0 %v2756_v8  ;;  %796 = vmatprep.mubr.f32.mxu0 %v3598_v18  ;;  %v915_v8 = vld [vmem:[#allocation9 + $0xe8] sm:$0xff] }
 0x49c   :  { %2759 = vmatprep.subr.bf16.mxu0 %v2758_v10  ;;  %v3831_v10 = vpack.c.bf16 %v906_v6, %v902_v5  ;;  %v3835_v11 = vpack.c.bf16 %v915_v8, %v911_v7  ;;  %v2525_v6 = vsel %vm528_vm4, 1.0, %v3598_v18 }
 0x49f   :  { %2761 = vmatpush1.bf16.msra.mxu0 %v2760_v19  ;;  %v923_v19 = vld [vmem:[#allocation9 + $0x128] sm:$0xff] }
 0x4a0   :  { %2763 = vmatprep.subr.bf16.mxu0 %v2762_v20  ;;  %v3838_v20 = vpack.c.bf16 %v914_v16, %v910_v12  ;;  %v3841_v21 = vpack.c.bf16 %v923_v19, %v919_v17 }
 0x4a3   :  { %2765 = vmatpush1.bf16.msra.mxu0 %v2764_v25  ;;  %v931_v25 = vld [vmem:[#allocation9 + $0x168] sm:$0xff] }
 0x4a4   :  { %2767 = vmatprep.subr.bf16.mxu0 %v2766_v26  ;;  %v3844_v26 = vpack.c.bf16 %v922_v23, %v918_v22  ;;  %v3847_v27 = vpack.c.bf16 %v931_v25, %v927_v24  ;;  %v3599_v22 = vmov 0.0|0.0  }
 0x4a5   :  { %2751 = vmatprep.subr.bf16.mxu1 %v3599_v22 }
 0x4a7   :  { %2769 = vmatpush1.bf16.msra.mxu0 %v2768_v31  ;;  %v939_v31 = vld [vmem:[#allocation9 + $0x1a8] sm:$0xff] }
 0x4a8   :  { %2771 = vmatprep.subr.bf16.mxu0 %v2770_v32  ;;  %v3850_v32 = vpack.c.bf16 %v930_v29, %v926_v28  ;;  %v3853_v33 = vpack.c.bf16 %v939_v31, %v935_v30  ;;  %v2526_v31 = vld [vmem:[%s4320_s16] ss:$0 sm:$0xff] }
 0x4ab   :  { %2773 = vmatpush1.bf16.msra.mxu0 %v2772_v37  ;;  %v947_v37 = vld [vmem:[#allocation9 + $0x1e8] sm:$0xff] }
 0x4ac   :  { %2775 = vmatprep.subr.bf16.mxu0 %v2774_v38  ;;  %v3856_v38 = vpack.c.bf16 %v938_v35, %v934_v34  ;;  %v3859_v39 = vpack.c.bf16 %v947_v37, %v943_v36  ;;  %v2527_v37 = vld [vmem:[%s4321_s17] ss:$0 sm:$0xff] }
 0x4af   :  { %2777 = vmatpush1.bf16.msra.mxu0 %v2776_v43  ;;  %v2524_v43 = vld [vmem:[%s4319_s15] ss:$0 sm:$0xff] }
 0x4b0   :  { %2779 = vmatprep.subr.bf16.mxu0 %v2778_v44 }
 0x4b3   :  { %2781 = vmatpush1.bf16.msra.mxu0 %v2780_v49  ;;  %v714_v49 = vsub.s32 0, %v3889_v48 }
 0x4b4   :  { %2783 = vmatprep.subr.bf16.mxu0 %v2782_v50  ;;  %v3895_v50 = vld [vmem:[%s4315_s11] sm:$0xf] }
 0x4b5   :  { %v3903_v54 = vrot.slane %v3895_v50, %v714_v49 }
 0x4b7   :  { %2785 = vmatpush1.bf16.msra.mxu0 %v2784_v55  ;;  %v3906_v55 = vrot.slane %v3895_v50, %v718_v52 }
 0x4b8   :  { %2819 = vmatprep.subr.bf16.mxu0 %v3814_v56 }
 0x4ba   :  { %797 = vmatmul.mubr.f32.vlgmr.msra.gmra.mrb[4].mxu0 %v3807_v9 }
 0x4bb   :  { %2821 = vmatpush1.bf16.msra.mxu0 %v3816_v61  ;;  %802 = vmatprep.mubr.f32.mxu0 %v3598_v18 }
 0x4bc   :  { %2823 = vmatprep.subr.bf16.mxu0 %v3819_v62 }
 0x4be   :  { %803 = vmatmul.mubr.f32.gmra.mrb[6].mxu0 %v3809_v13 }
 0x4bf   :  { %2825 = vmatpush1.bf16.msra.mxu0 %v3824_v3  ;;  %1014 = vmatprep.mubr.f32.mxu0 %v3598_v18 }
 0x4c0   :  { %2827 = vmatprep.subr.bf16.mxu0 %v3827_v4 }
 0x4c3   :  { %2829 = vmatpush1.bf16.msra.mxu0 %v3831_v10 }
 0x4c4   :  { %2831 = vmatprep.subr.bf16.mxu0 %v3835_v11 }
 0x4c7   :  { %2833 = vmatpush1.bf16.msra.mxu0 %v3838_v20 }
 0x4c8   :  { %2835 = vmatprep.subr.bf16.mxu0 %v3841_v21 }
 0x4cb   :  { %2837 = vmatpush1.bf16.msra.mxu0 %v3844_v26 }
 0x4cc   :  { %2839 = vmatprep.subr.bf16.mxu0 %v3847_v27 }
 0x4cf   :  { %2841 = vmatpush1.bf16.msra.mxu0 %v3850_v32 }
 0x4d0   :  { %2843 = vmatprep.subr.bf16.mxu0 %v3853_v33 }
 0x4d3   :  { %2845 = vmatpush1.bf16.msra.mxu0 %v3856_v38 }
 0x4d4   :  { %2847 = vmatprep.subr.bf16.mxu0 %v3859_v39 }
 0x4d7   :  { %2849 = vmatpush1.bf16.msra.mxu0 %v3862_v42 }
 0x4d8   :  { %2883 = vmatprep.subr.bf16.mxu0 %v3814_v56 }
 0x4da   :  { %1015 = vmatmul.mubr.f32.vlgmr.msra.gmra.mrb[8].mxu0 %v3598_v18 }
 0x4db   :  { %2885 = vmatpush1.bf16.msra.mxu0 %v3816_v61  ;;  %1185 = vmatprep.mubr.f32.mxu0 %v3598_v18 }
 0x4dc   :  { %2887 = vmatprep.subr.bf16.mxu0 %v3819_v62 }
 0x4df   :  { %2889 = vmatpush1.bf16.msra.mxu0 %v3824_v3 }
 0x4e0   :  { %2891 = vmatprep.subr.bf16.mxu0 %v3827_v4 }
 0x4e3   :  { %2893 = vmatpush1.bf16.msra.mxu0 %v3831_v10 }
 0x4e4   :  { %2895 = vmatprep.subr.bf16.mxu0 %v3835_v11 }
 0x4e7   :  { %2897 = vmatpush1.bf16.msra.mxu0 %v3838_v20 }
 0x4e8   :  { %2899 = vmatprep.subr.bf16.mxu0 %v3841_v21 }
 0x4eb   :  { %2901 = vmatpush1.bf16.msra.mxu0 %v3844_v26 }
 0x4ec   :  { %2903 = vmatprep.subr.bf16.mxu0 %v3847_v27 }
 0x4ef   :  { %2905 = vmatpush1.bf16.msra.mxu0 %v3850_v32 }
 0x4f0   :  { %2907 = vmatprep.subr.bf16.mxu0 %v3853_v33 }
 0x4f3   :  { %2909 = vmatpush1.bf16.msra.mxu0 %v3856_v38 }
 0x4f4   :  { %2911 = vmatprep.subr.bf16.mxu0 %v3859_v39 }
 0x4f7   :  { %2913 = vmatpush1.bf16.msra.mxu0 %v3862_v42 }
 0x4f8   :  { %2947 = vmatprep.subr.bf16.mxu0 %v3814_v56 }
 0x56d   :  { %v2672_v44 = vpop.f32.mrb[2].mxu0 }
 0x56e   :  { %v517_v45 = vadd.f32 %v2672_v44, %v2524_v43  ;;  %v511_v46 = vpop.f32.mrb[3].mxu0 }
 0x56f   :  { %v512_v47 = vadd.f32 %v2524_v43, %v511_v46  ;;  %v653_v46 = vld [vmem:[#allocation7 + $0x38] sm:$0xff] }
 0x570   :  { %524 = vadd.xlane.f32.xlu1 %v517_v45 }
 0x571   :  { %522 = vadd.xlane.f32.xlu0 %v512_v47 }
 0x58d   :  { %v3897_v51 = vpop.f32.mrb[4].mxu0 }
 0x58e   :  { %v3900_v53 = vpop.f32.mrb[5].mxu0 }
 0x591   :  { %v804_v14 = vpop.f32.mrb[6].mxu0 }
 0x592   :  { %v3909_v57 = vadd.f32 %v804_v14, %v3903_v54  ;;  %v806_v58 = vpop.f32.mrb[7].mxu0 }
 0x593   :  { %v3912_v59 = vadd.f32 %v806_v58, %v3906_v55  ;;  %v648_v58 = vld [vmem:[#allocation7 + $0x10] sm:$0xff] }
 0x5ad   :  { %v3914_v60 = vpop.f32.mrb[8].mxu0 }
 0x5ae   :  { %v3916_v63 = vpop.f32.mrb[9].mxu0 }
 0x5fd   :  { %v525_v0 = vpop.xlane.xlu1 %524 }
 0x5fe   :  { %v527_v1 = vmul.f32 0.01, %v525_v0  ;;  %v523_v2 = vpop.xlane.xlu0 %522  ;;  %v652_v0 = vld [vmem:[#allocation7 + $0x30] sm:$0xff] }
 0x5ff   :  { %v526_v5 = vmul.f32 0.01, %v523_v2  ;;  %v661_v2 = vld [vmem:[#allocation7 + $0x78] sm:$0xff] }
 0x600   :  { %v532_v7 = vsub.f32 %v517_v45, %v527_v1  ;;  %v649_v45 = vld [vmem:[#allocation7 + $0x18] sm:$0xff] }
 0x601   :  { %v531_v8 = vsub.f32 %v512_v47, %v526_v5  ;;  %v2786_v52 = vpack.c.bf16 %v653_v46, %v649_v45  ;;  %v657_v1 = vld [vmem:[#allocation7 + $0x58] sm:$0xff]  ;;  %v567_v5 = vld [vmem:[%s4322_s18] sm:$0x1] }
 0x602   :  { %v534_v12 = vmul.f32 %v2525_v6, %v532_v7  ;;  %v2790_v7 = vpack.c.bf16 %v661_v2, %v657_v1  ;;  %v693_v45 = vld [vmem:[#allocation7 + $0x178] sm:$0xff]  ;;  %v696_v2 = vld [vmem:[#allocation7 + $0x190] sm:$0xff] }
 0x603   :  { %v533_v16 = vmul.f32 %v2525_v6, %v531_v8  ;;  %v2788_v6 = vpack.c.bf16 %v652_v0, %v648_v58  ;;  %v656_v8 = vld [vmem:[#allocation7 + $0x50] sm:$0xff]  ;;  %v701_v58 = vld [vmem:[#allocation7 + $0x1b8] sm:$0xff] }
 0x604   :  { %v536_v17 = vmul.f32 %v534_v12, %v534_v12 }
 0x605   :  { %v535_v19 = vmul.f32 %v533_v16, %v533_v16 }
 0x606   :  { %539 = vadd.xlane.f32.xlu1 %v536_v17  ;;  %v669_v17 = vld [vmem:[#allocation7 + $0xb8] sm:$0xff] }
 0x607   :  { %537 = vadd.xlane.f32.xlu0 %v535_v19 }
 0x693   :  { %v540_v15 = vpop.xlane.xlu1 %539 }
 0x694   :  { %v542_v23 = vmul.f32 0.01, %v540_v15  ;;  %v538_v24 = vpop.xlane.xlu0 %537 }
 0x695   :  { %v541_v25 = vmul.f32 0.01, %v538_v24  ;;  %v668_v24 = vld [vmem:[#allocation7 + $0xb0] sm:$0xff] }
 0x696   :  { %v544_v28 = vadd.f32 1e-05, %v542_v23  ;;  %v664_v23 = vld [vmem:[#allocation7 + $0x90] sm:$0xff] }
 0x697   :  { %v543_v29 = vadd.f32 1e-05, %v541_v25  ;;  %v673_v25 = vld [vmem:[#allocation7 + $0xd8] sm:$0xff] }
 0x698   :  { %3360 = vrsqrt.f32 %v544_v28  ;;  %v677_v28 = vld [vmem:[#allocation7 + $0xf8] sm:$0xff] }
 0x699   :  { %3362 = vrsqrt.f32 %v543_v29  ;;  %v2796_v29 = vpack.c.bf16 %v668_v24, %v664_v23 }
 0x6a2   :  { %v3361_v30 = vpop.eup %3360 }
 0x6a3   :  { %v3363_v34 = vpop.eup %3362  ;;  %v548_v35 = vmul.f32 %v3361_v30, %v534_v12  ;;  %v660_v12 = vld [vmem:[#allocation7 + $0x70] sm:$0xff]  ;;  %v2798_v30 = vpack.c.bf16 %v677_v28, %v673_v25 }
 0x6a4   :  { %v547_v36 = vmul.f32 %v3363_v34, %v533_v16  ;;  %v665_v16 = vld [vmem:[#allocation7 + $0x98] sm:$0xff]  ;;  %v2792_v19 = vpack.c.bf16 %v660_v12, %v656_v8  ;;  %v676_v34 = vld [vmem:[#allocation7 + $0xf0] sm:$0xff] }
 0x6a5   :  { %v556_v40 = vmul.f32 %v2526_v31, %v548_v35  ;;  %v2794_v15 = vpack.c.bf16 %v669_v17, %v665_v16  ;;  %v681_v35 = vld [vmem:[#allocation7 + $0x118] sm:$0xff]  ;;  %v704_v16 = vld [vmem:[#allocation7 + $0x1d0] sm:$0xff] }
 0x6a6   :  { %v555_v41 = vmul.f32 %v2526_v31, %v547_v36  ;;  %v672_v31 = vld [vmem:[#allocation7 + $0xd0] sm:$0xff]  ;;  %v685_v36 = vld [vmem:[#allocation7 + $0x138] sm:$0xff] }
 0x6a7   :  { %v564_v43 = vadd.f32 %v2527_v37, %v556_v40  ;;  %v2802_v40 = vpack.c.bf16 %v685_v36, %v681_v35  ;;  %v708_v17 = vld [vmem:[#allocation7 + $0x1f0] sm:$0xff] }
 0x6a8   :  { %v563_v44 = vadd.f32 %v2527_v37, %v555_v41  ;;  %v2800_v37 = vpack.c.bf16 %v676_v34, %v672_v31  ;;  %v680_v41 = vld [vmem:[#allocation7 + $0x110] sm:$0xff]  ;;  %v2816_v23 = vpack.c.bf16 %v708_v17, %v704_v16 }
 0x6a9   :  { %v566_v47 = vmax.f32 %v564_v43, 0.0  ;;  %v684_v43 = vld [vmem:[#allocation7 + $0x130] sm:$0xff] }
 0x6aa   :  { %v565_v49 = vmax.f32 %v563_v44, 0.0  ;;  %v689_v44 = vld [vmem:[#allocation7 + $0x158] sm:$0xff]  ;;  %v2804_v46 = vpack.c.bf16 %v684_v43, %v680_v41  ;;  %v888_v25 = vld [vmem:[#allocation9 + $0x10] sm:$0xff] }
 0x6ab   :  { %v892_v28 = vld [vmem:[#allocation9 + $0x30] sm:$0xff] }
 0x6ac   :  { %v2752_v14 = vpack.c.bf16 %v566_v47, %v565_v49  ;;  %v2806_v47 = vpack.c.bf16 %v693_v45, %v689_v44  ;;  %v688_v49 = vld [vmem:[#allocation7 + $0x150] sm:$0xff]  ;;  %v3935_v31 = vpack.c.bf16 %v892_v28, %v888_v25 }
 0x6ad   :  { %v896_v35 = vld [vmem:[#allocation9 + $0x50] sm:$0xff] }
 0x6ae   :  { %2753 = vmatpush3.bf16.xpose.msra.mxu1 %v2752_v14  ;;  %v697_v14 = vld [vmem:[#allocation7 + $0x198] sm:$0xff]  ;;  %v900_v36 = vld [vmem:[#allocation9 + $0x70] sm:$0xff] }
 0x6af   :  { %2787 = vmatprep.subr.bf16.mxu1 %v2786_v52  ;;  %v692_v52 = vld [vmem:[#allocation7 + $0x170] sm:$0xff]  ;;  %v2810_v1 = vpack.c.bf16 %v701_v58, %v697_v14  ;;  %v3943_v41 = vpack.c.bf16 %v900_v36, %v896_v35  ;;  %v921_v58 = vld [vmem:[#allocation9 + $0x118] sm:$0xff] }
 0x6b0   :  { %v2808_v0 = vpack.c.bf16 %v692_v52, %v688_v49  ;;  %v904_v44 = vld [vmem:[#allocation9 + $0x90] sm:$0xff]  ;;  %v949_v35 = vld [vmem:[#allocation9 + $0x1f8] sm:$0xff] }
 0x6b1   :  { %v908_v45 = vld [vmem:[#allocation9 + $0xb0] sm:$0xff] }
 0x6b2   :  { %v3950_v49 = vpack.c.bf16 %v908_v45, %v904_v44  ;;  %v912_v52 = vld [vmem:[#allocation9 + $0xd0] sm:$0xff] }
 0x6b3   :  { %v916_v14 = vld [vmem:[#allocation9 + $0xf0] sm:$0xff] }
 0x6b4   :  { %v928_v16 = vld [vmem:[#allocation9 + $0x150] sm:$0xff] }
 0x6b5   :  { %2678 = vmatmul.mubr.f32.vlgmr.msra.gmra.mrb[2].mxu1 %v567_v5  ;;  %v700_v5 = vld [vmem:[#allocation7 + $0x1b0] sm:$0xff] }
 0x6b6   :  { %2789 = vmatpush1.bf16.msra.mxu1 %v2788_v6  ;;  %873 = vmatprep.mubr.f32.mxu1 %v3598_v18  ;;  %v705_v6 = vld [vmem:[#allocation7 + $0x1d8] sm:$0xff]  ;;  %v2812_v8 = vpack.c.bf16 %v700_v5, %v696_v2  ;;  %v920_v2 = vld [vmem:[#allocation9 + $0x110] sm:$0xff] }
 0x6b7   :  { %2791 = vmatprep.subr.bf16.mxu1 %v2790_v7  ;;  %v709_v7 = vld [vmem:[#allocation7 + $0x1f8] sm:$0xff]  ;;  %v924_v5 = vld [vmem:[#allocation9 + $0x130] sm:$0xff] }
 0x6b8   :  { %v2814_v12 = vpack.c.bf16 %v709_v7, %v705_v6  ;;  %v929_v6 = vld [vmem:[#allocation9 + $0x158] sm:$0xff]  ;;  %v932_v17 = vld [vmem:[#allocation9 + $0x170] sm:$0xff] }
 0x6b9   :  { %v933_v7 = vld [vmem:[#allocation9 + $0x178] sm:$0xff]  ;;  %v936_v28 = vld [vmem:[#allocation9 + $0x190] sm:$0xff] }
 0x6ba   :  { %2793 = vmatpush1.bf16.msra.mxu1 %v2792_v19  ;;  %v889_v19 = vld [vmem:[#allocation9 + $0x18] sm:$0xff]  ;;  %v948_v44 = vld [vmem:[#allocation9 + $0x1f0] sm:$0xff] }
 0x6bb   :  { %2795 = vmatprep.subr.bf16.mxu1 %v2794_v15  ;;  %v893_v15 = vld [vmem:[#allocation9 + $0x38] sm:$0xff] }
 0x6bc   :  { %v3933_v24 = vpack.c.bf16 %v893_v15, %v889_v19  ;;  %v937_v19 = vld [vmem:[#allocation9 + $0x198] sm:$0xff] }
 0x6bd   :  { %v941_v15 = vld [vmem:[#allocation9 + $0x1b8] sm:$0xff] }
 0x6be   :  { %2797 = vmatpush1.bf16.msra.mxu1 %v2796_v29  ;;  %v897_v29 = vld [vmem:[#allocation9 + $0x58] sm:$0xff]  ;;  %v3972_v25 = vpack.c.bf16 %v941_v15, %v937_v19 }
 0x6bf   :  { %2799 = vmatprep.subr.bf16.mxu1 %v2798_v30  ;;  %v901_v30 = vld [vmem:[#allocation9 + $0x78] sm:$0xff] }
 0x6c0   :  { %v3938_v34 = vpack.c.bf16 %v901_v30, %v897_v29  ;;  %v940_v29 = vld [vmem:[#allocation9 + $0x1b0] sm:$0xff]  ;;  %v945_v30 = vld [vmem:[#allocation9 + $0x1d8] sm:$0xff] }
 0x6c1   :  { %v3975_v36 = vpack.c.bf16 %v940_v29, %v936_v28 }
 0x6c2   :  { %2801 = vmatpush1.bf16.msra.mxu1 %v2800_v37  ;;  %v905_v37 = vld [vmem:[#allocation9 + $0x98] sm:$0xff] }
 0x6c3   :  { %2803 = vmatprep.subr.bf16.mxu1 %v2802_v40  ;;  %v909_v40 = vld [vmem:[#allocation9 + $0xb8] sm:$0xff] }
 0x6c4   :  { %v3946_v43 = vpack.c.bf16 %v909_v40, %v905_v37  ;;  %v3978_v37 = vpack.c.bf16 %v949_v35, %v945_v30  ;;  %v944_v40 = vld [vmem:[#allocation9 + $0x1d0] sm:$0xff]  ;;  %v4019_v35 = vadd.f32 %v3900_v53, %v3906_v55 }
 0x6c5   :  { %v3981_v45 = vpack.c.bf16 %v948_v44, %v944_v40  ;;  %v4025_v44 = vadd.f32 %v3897_v51, %v3903_v54 }
 0x6c6   :  { %2805 = vmatpush1.bf16.msra.mxu1 %v2804_v46  ;;  %v913_v46 = vld [vmem:[#allocation9 + $0xd8] sm:$0xff] }
 0x6c7   :  { %2807 = vmatprep.subr.bf16.mxu1 %v2806_v47  ;;  %v917_v47 = vld [vmem:[#allocation9 + $0xf8] sm:$0xff] }
 0x6ca   :  { %2809 = vmatpush1.bf16.msra.mxu1 %v2808_v0  ;;  %v925_v0 = vld [vmem:[#allocation9 + $0x138] sm:$0xff] }
 0x6cb   :  { %2811 = vmatprep.subr.bf16.mxu1 %v2810_v1  ;;  %v3957_v1 = vpack.c.bf16 %v916_v14, %v912_v52 }
 0x6ce   :  { %2813 = vmatpush1.bf16.msra.mxu1 %v2812_v8  ;;  %v3963_v8 = vpack.c.bf16 %v924_v5, %v920_v2 }
 0x6cf   :  { %2815 = vmatprep.subr.bf16.mxu1 %v2814_v12  ;;  %v3966_v12 = vpack.c.bf16 %v933_v7, %v929_v6  ;;  %v722_v6 = vsub.s32 2, %v3889_v48 }
 0x6d1   :  { %v723_v19 = vrot.slane %v3895_v50, %v722_v6 }
 0x6d2   :  { %2817 = vmatpush1.bf16.msra.mxu1 %v2816_v23  ;;  %v3969_v23 = vpack.c.bf16 %v932_v17, %v928_v16  ;;  %v726_v16 = vsub.s32 3, %v3889_v48  ;;  %v1093_v48 = vadd.f32 %v3916_v63, %v4019_v35 }
 0x6d3   :  { %2851 = vmatprep.subr.bf16.mxu1 %v3933_v24 }
 0x6d4   :  { %v727_v15 = vrot.slane %v3895_v50, %v726_v16  ;;  %v1092_v50 = vadd.f32 %v3914_v60, %v4025_v44 }
 0x6d5   :  { %874 = vmatmul.mubr.f32.vlgmr.msra.gmra.mrb[4].mxu1 %v3807_v9  ;;  %v3954_v9 = vpack.c.bf16 %v917_v47, %v913_v46  ;;  %v569_v46 = vstv %s4323_s19 }
 0x6d6   :  { %2853 = vmatpush1.bf16.msra.mxu1 %v3935_v31  ;;  %879 = vmatprep.mubr.f32.mxu1 %v3598_v18 }
 0x6d7   :  { %2855 = vmatprep.subr.bf16.mxu1 %v3938_v34 }
 0x6d9   :  { %880 = vmatmul.mubr.f32.gmra.mrb[6].mxu1 %v3809_v13  ;;  %v3960_v13 = vpack.c.bf16 %v925_v0, %v921_v58 }
 0x6da   :  { %2857 = vmatpush1.bf16.msra.mxu1 %v3943_v41  ;;  %1085 = vmatprep.mubr.f32.mxu1 %v3598_v18 }
 0x6db   :  { %2859 = vmatprep.subr.bf16.mxu1 %v3946_v43 }
 0x6de   :  { %2861 = vmatpush1.bf16.msra.mxu1 %v3950_v49 }
 0x6df   :  { %2863 = vmatprep.subr.bf16.mxu1 %v3954_v9 }
 0x6e2   :  { %2865 = vmatpush1.bf16.msra.mxu1 %v3957_v1 }
 0x6e3   :  { %2867 = vmatprep.subr.bf16.mxu1 %v3960_v13 }
 0x6e6   :  { %2869 = vmatpush1.bf16.msra.mxu1 %v3963_v8 }
 0x6e7   :  { %2871 = vmatprep.subr.bf16.mxu1 %v3966_v12 }
 0x6ea   :  { %2873 = vmatpush1.bf16.msra.mxu1 %v3969_v23 }
 0x6eb   :  { %2875 = vmatprep.subr.bf16.mxu1 %v3972_v25 }
 0x6ee   :  { %2877 = vmatpush1.bf16.msra.mxu1 %v3975_v36 }
 0x6ef   :  { %2879 = vmatprep.subr.bf16.mxu1 %v3978_v37 }
 0x6f2   :  { %2881 = vmatpush1.bf16.msra.mxu1 %v3981_v45 }
 0x6f3   :  { %2915 = vmatprep.subr.bf16.mxu1 %v3933_v24 }
 0x6f5   :  { %1086 = vmatmul.mubr.f32.vlgmr.msra.gmra.mrb[8].mxu1 %v3598_v18 }
 0x6f6   :  { %2917 = vmatpush1.bf16.msra.mxu1 %v3935_v31  ;;  %1256 = vmatprep.mubr.f32.mxu1 %v3598_v18 }
 0x6f7   :  { %2919 = vmatprep.subr.bf16.mxu1 %v3938_v34 }
 0x6fa   :  { %2921 = vmatpush1.bf16.msra.mxu1 %v3943_v41 }
 0x6fb   :  { %2923 = vmatprep.subr.bf16.mxu1 %v3946_v43 }
 0x6fe   :  { %2925 = vmatpush1.bf16.msra.mxu1 %v3950_v49 }
 0x6ff   :  { %2927 = vmatprep.subr.bf16.mxu1 %v3954_v9 }
 0x702   :  { %2929 = vmatpush1.bf16.msra.mxu1 %v3957_v1 }
 0x703   :  { %2931 = vmatprep.subr.bf16.mxu1 %v3960_v13 }
 0x706   :  { %2933 = vmatpush1.bf16.msra.mxu1 %v3963_v8 }
 0x707   :  { %2935 = vmatprep.subr.bf16.mxu1 %v3966_v12 }
 0x70a   :  { %2937 = vmatpush1.bf16.msra.mxu1 %v3969_v23 }
 0x70b   :  { %2939 = vmatprep.subr.bf16.mxu1 %v3972_v25 }
 0x70e   :  { %2941 = vmatpush1.bf16.msra.mxu1 %v3975_v36 }
 0x70f   :  { %2943 = vmatprep.subr.bf16.mxu1 %v3978_v37 }
 0x712   :  { %2945 = vmatpush1.bf16.msra.mxu1 %v3981_v45 }
 0x713   :  { %2979 = vmatprep.subr.bf16.mxu1 %v3933_v24 }
 0x788   :  { %v636_v47 = vpop.f32.mrb[2].mxu1 }
 0x789   :  { %v637_v52 = vadd.f32 %v636_v47, %v569_v46  ;;  %v2679_v14 = vpop.f32.mrb[3].mxu1  ;;  %v2530_v46 = vmul.f32 -1.442695, %v1093_v48  ;;  %v2529_v47 = vmul.f32 -1.442695, %v1092_v50 }
 0x78b   :  { %v2528_v58 = vmul.f32 -1.442695, %v637_v52 }
 0x78d   :  { %3364 = vpow2.f32 %v2528_v58 }
 0x797   :  { %v3365_v0 = vpop.eup %3364 }
 0x798   :  { %v643_v2 = vadd.f32 1.0, %v3365_v0 }
 0x79a   :  { %3366 = vrcp.f32 %v643_v2 }
 0x79b   :  { %3368 = vpow2.f32 %v2530_v46 }
 0x79c   :  { %3370 = vpow2.f32 %v2529_v47 }
 0x7a4   :  { %v3367_v5 = vpop.eup %3366 }
 0x7a5   :  { %2503 = vst.msk [vmem:[%s4324_s20 + $0x1] sm:$0x1] %vm2501_vm6, %v3367_v5  ;;  %v3369_v52 = vpop.eup %3368 }
 0x7a6   :  { %v3371_v14 = vpop.eup %3370  ;;  %v1105_v53 = vadd.f32 1.0, %v3369_v52 }
 0x7a7   :  { %v1099_v55 = vadd.f32 1.0, %v3371_v14 }
 0x7a8   :  { %v875_v7 = vpop.f32.mrb[4].mxu1  ;;  %3372 = vrcp.f32 %v1105_v53 }
 0x7a9   :  { %v877_v17 = vpop.f32.mrb[5].mxu1  ;;  %v4031_v58 = vadd.f32 %v875_v7, %v723_v19  ;;  %3374 = vrcp.f32 %v1099_v55 }
 0x7aa   :  { %v4033_v0 = vadd.f32 %v877_v17, %v727_v15 }
 0x7ac   :  { %v881_v28 = vpop.f32.mrb[6].mxu1 }
 0x7ad   :  { %v4015_v29 = vadd.f32 %v881_v28, %v723_v19  ;;  %v883_v30 = vpop.f32.mrb[7].mxu1 }
 0x7ae   :  { %v4021_v40 = vadd.f32 %v883_v30, %v727_v15 }
 0x7b2   :  { %v3373_v5 = vpop.eup %3372 }
 0x7b3   :  { %v3375_v6 = vpop.eup %3374  ;;  %v1115_v28 = vmul.f32 0.0, %v3373_v5 }
 0x7c8   :  { %v1087_v51 = vpop.f32.mrb[8].mxu1 }
 0x7c9   :  { %v1094_v54 = vadd.f32 %v1087_v51, %v4031_v58  ;;  %v1089_v63 = vpop.f32.mrb[9].mxu1 }
 0x7ca   :  { %v1095_v60 = vadd.f32 %v1089_v63, %v4033_v0 }
 0x7cb   :  { %3376 = vtanh.f32 %v1094_v54 }
 0x7cc   :  { %v2531_v2 = vmul.f32 -1.442695, %v1095_v60 }
 0x7ce   :  { %3378 = vpow2.f32 %v2531_v2 }
 0x7d5   :  { %v3377_v16 = vpop.eup %3376 }
 0x7d6   :  { %v1116_v30 = vmul.f32 %v3377_v16, %v3375_v6 }
 0x7d8   :  { %v3379_v7 = vpop.eup %3378  ;;  %v4037_v19 = vadd.f32 %v1116_v30, %v1115_v28 }
 0x7d9   :  { %v1112_v17 = vadd.f32 1.0, %v3379_v7 }
 0x7da   :  { %3380 = vtanh.f32 %v4037_v19 }
 0x7db   :  { %3382 = vrcp.f32 %v1112_v17 }
 0x7e4   :  { %v3381_v15 = vpop.eup %3380 }
 0x7e5   :  { %v3383_v48 = vpop.eup %3382 }
 0x7e6   :  { %v1119_v50 = vmul.f32 %v3383_v48, %v3381_v15 }
 0x7e8   :  { %1120 = vst [vmem:[#allocation2] sm:$0x3] %v1119_v50  ;;  %1186 = vmatmul.mubr.f32.vlgmr.msra.gmra.mrb[10].mxu0 %v1119_v50  ;;  %1257 = vmatmul.mubr.f32.vlgmr.msra.gmra.mrb[10].mxu1 %v1119_v50 }
 0x7e9   :  { %2949 = vmatpush1.bf16.msra.mxu0 %v3816_v61  ;;  %2981 = vmatpush1.bf16.msra.mxu1 %v3935_v31 }
 0x7ea   :  { %2951 = vmatprep.subr.bf16.mxu0 %v3819_v62  ;;  %2983 = vmatprep.subr.bf16.mxu1 %v3938_v34 }
 0x7eb   :  { %1374 = vmatprep.mubr.f32.mxu0 %v3598_v18  ;;  %1445 = vmatprep.mubr.f32.mxu1 %v3598_v18 }
 0x7ed   :  { %2953 = vmatpush1.bf16.msra.mxu0 %v3824_v3  ;;  %2985 = vmatpush1.bf16.msra.mxu1 %v3943_v41 }
 0x7ee   :  { %2955 = vmatprep.subr.bf16.mxu0 %v3827_v4  ;;  %2987 = vmatprep.subr.bf16.mxu1 %v3946_v43 }
 0x7f1   :  { %2957 = vmatpush1.bf16.msra.mxu0 %v3831_v10  ;;  %2989 = vmatpush1.bf16.msra.mxu1 %v3950_v49 }
 0x7f2   :  { %2959 = vmatprep.subr.bf16.mxu0 %v3835_v11  ;;  %2991 = vmatprep.subr.bf16.mxu1 %v3954_v9 }
 0x7f5   :  { %2961 = vmatpush1.bf16.msra.mxu0 %v3838_v20  ;;  %2993 = vmatpush1.bf16.msra.mxu1 %v3957_v1 }
 0x7f6   :  { %2963 = vmatprep.subr.bf16.mxu0 %v3841_v21  ;;  %2995 = vmatprep.subr.bf16.mxu1 %v3960_v13 }
 0x7f9   :  { %2965 = vmatpush1.bf16.msra.mxu0 %v3844_v26  ;;  %2997 = vmatpush1.bf16.msra.mxu1 %v3963_v8 }
 0x7fa   :  { %2967 = vmatprep.subr.bf16.mxu0 %v3847_v27  ;;  %2999 = vmatprep.subr.bf16.mxu1 %v3966_v12 }
 0x7fd   :  { %2969 = vmatpush1.bf16.msra.mxu0 %v3850_v32  ;;  %3001 = vmatpush1.bf16.msra.mxu1 %v3969_v23 }
 0x7fe   :  { %2971 = vmatprep.subr.bf16.mxu0 %v3853_v33  ;;  %3003 = vmatprep.subr.bf16.mxu1 %v3972_v25 }
 0x801   :  { %2973 = vmatpush1.bf16.msra.mxu0 %v3856_v38  ;;  %3005 = vmatpush1.bf16.msra.mxu1 %v3975_v36 }
 0x802   :  { %2975 = vmatprep.subr.bf16.mxu0 %v3859_v39  ;;  %3007 = vmatprep.subr.bf16.mxu1 %v3978_v37 }
 0x805   :  { %2977 = vmatpush1.bf16.msra.mxu0 %v3862_v42  ;;  %3009 = vmatpush1.bf16.msra.mxu1 %v3981_v45 }
 0x806   :  { %3011 = vmatprep.subr.bf16.mxu0 %v3814_v56  ;;  %3043 = vmatprep.subr.bf16.mxu1 %v3933_v24 }
 0x8bb   :  { %v1187_v46 = vpop.f32.mrb[10].mxu0  ;;  %v1258_v47 = vpop.f32.mrb[10].mxu1 }
 0x8bc   :  { %v1267_v52 = vrot.slane %v1187_v46, 6  ;;  %v1189_v14 = vpop.f32.mrb[11].mxu0  ;;  %v1260_v53 = vpop.f32.mrb[11].mxu1  ;;  %v1269_v6 = vrot.slane %v1258_v47, 6 }
 0x8bd   :  { %v1268_v55 = vrot.slane %v1189_v14, 6  ;;  %v1270_v2 = vrot.slane %v1260_v53, 6 }
 0x8be   :  { %v1275_v51 = vadd.f32 %v1267_v52, %v4025_v44  ;;  %v1277_v28 = vadd.f32 %v1269_v6, %v4031_v58  ;;  %v1299_v52 = vrot.slane %v4037_v19, 6 }
 0x8bf   :  { %v1276_v54 = vadd.f32 %v1268_v55, %v4019_v35  ;;  %v1278_v5 = vadd.f32 %v1270_v2, %v4033_v0 }
 0x8c0   :  { %v2532_v63 = vmul.f32 -1.442695, %v1275_v51 }
 0x8c1   :  { %v2533_v60 = vmul.f32 -1.442695, %v1276_v54  ;;  %v2534_v16 = vmul.f32 -1.442695, %v1278_v5 }
 0x8c2   :  { %3384 = vpow2.f32 %v2532_v63 }
 0x8c3   :  { %3386 = vpow2.f32 %v2533_v60 }
 0x8c4   :  { %3388 = vpow2.f32 %v2534_v16 }
 0x8c5   :  { %3390 = vtanh.f32 %v1277_v28 }
 0x8cc   :  { %v3385_v30 = vpop.eup %3384 }
 0x8cd   :  { %v3387_v7 = vpop.eup %3386  ;;  %v1282_v17 = vadd.f32 1.0, %v3385_v30 }
 0x8ce   :  { %v1288_v15 = vadd.f32 1.0, %v3387_v7  ;;  %v3389_v48 = vpop.eup %3388 }
 0x8cf   :  { %3392 = vrcp.f32 %v1282_v17  ;;  %v3391_v50 = vpop.eup %3390  ;;  %v1295_v55 = vadd.f32 1.0, %v3389_v48 }
 0x8d0   :  { %3394 = vrcp.f32 %v1288_v15 }
 0x8d1   :  { %3396 = vrcp.f32 %v1295_v55 }
 0x8d9   :  { %v3393_v46 = vpop.eup %3392 }
 0x8da   :  { %v3395_v14 = vpop.eup %3394  ;;  %v1302_v53 = vmul.f32 %v3393_v46, %v3391_v50 }
 0x8db   :  { %v1301_v47 = vmul.f32 %v3395_v14, %v1299_v52  ;;  %v3397_v54 = vpop.eup %3396 }
 0x8dd   :  { %v4079_v51 = vadd.f32 %v1302_v53, %v1301_v47 }
 0x8df   :  { %3398 = vtanh.f32 %v4079_v51 }
 0x8e9   :  { %v3399_v63 = vpop.eup %3398 }
 0x8ea   :  { %v1305_v60 = vmul.f32 %v3399_v63, %v3397_v54 }
 0x8ec   :  { %1306 = vst [vmem:[#allocation2] sm:$0xc] %v1305_v60  ;;  %v1308_v2 = vrot.slane %v1305_v60, 2 }
 0x8ee   :  { %1375 = vmatmul.mubr.f32.vlgmr.msra.gmra.mrb[12].mxu0 %v1308_v2  ;;  %1446 = vmatmul.mubr.f32.vlgmr.msra.gmra.mrb[12].mxu1 %v1308_v2 }
 0x8ef   :  { %3013 = vmatpush1.bf16.msra.mxu0 %v3816_v61  ;;  %3045 = vmatpush1.bf16.msra.mxu1 %v3935_v31 }
 0x8f0   :  { %3015 = vmatprep.subr.bf16.mxu0 %v3819_v62  ;;  %3047 = vmatprep.subr.bf16.mxu1 %v3938_v34 }
 0x8f1   :  { %1563 = vmatprep.mubr.f32.mxu0 %v3598_v18  ;;  %1634 = vmatprep.mubr.f32.mxu1 %v3598_v18 }
 0x8f3   :  { %3017 = vmatpush1.bf16.msra.mxu0 %v3824_v3  ;;  %3049 = vmatpush1.bf16.msra.mxu1 %v3943_v41 }
 0x8f4   :  { %3019 = vmatprep.subr.bf16.mxu0 %v3827_v4  ;;  %3051 = vmatprep.subr.bf16.mxu1 %v3946_v43 }
 0x8f7   :  { %3021 = vmatpush1.bf16.msra.mxu0 %v3831_v10  ;;  %3053 = vmatpush1.bf16.msra.mxu1 %v3950_v49 }
 0x8f8   :  { %3023 = vmatprep.subr.bf16.mxu0 %v3835_v11  ;;  %3055 = vmatprep.subr.bf16.mxu1 %v3954_v9 }
 0x8fb   :  { %3025 = vmatpush1.bf16.msra.mxu0 %v3838_v20  ;;  %3057 = vmatpush1.bf16.msra.mxu1 %v3957_v1 }
 0x8fc   :  { %3027 = vmatprep.subr.bf16.mxu0 %v3841_v21  ;;  %3059 = vmatprep.subr.bf16.mxu1 %v3960_v13 }
 0x8ff   :  { %3029 = vmatpush1.bf16.msra.mxu0 %v3844_v26  ;;  %3061 = vmatpush1.bf16.msra.mxu1 %v3963_v8 }
 0x900   :  { %3031 = vmatprep.subr.bf16.mxu0 %v3847_v27  ;;  %3063 = vmatprep.subr.bf16.mxu1 %v3966_v12 }
 0x903   :  { %3033 = vmatpush1.bf16.msra.mxu0 %v3850_v32  ;;  %3065 = vmatpush1.bf16.msra.mxu1 %v3969_v23 }
 0x904   :  { %3035 = vmatprep.subr.bf16.mxu0 %v3853_v33  ;;  %3067 = vmatprep.subr.bf16.mxu1 %v3972_v25 }
 0x907   :  { %3037 = vmatpush1.bf16.msra.mxu0 %v3856_v38  ;;  %3069 = vmatpush1.bf16.msra.mxu1 %v3975_v36 }
 0x908   :  { %3039 = vmatprep.subr.bf16.mxu0 %v3859_v39  ;;  %3071 = vmatprep.subr.bf16.mxu1 %v3978_v37 }
 0x90b   :  { %3041 = vmatpush1.bf16.msra.mxu0 %v3862_v42  ;;  %3073 = vmatpush1.bf16.msra.mxu1 %v3981_v45 }
 0x90c   :  { %3075 = vmatprep.subr.bf16.mxu0 %v3814_v56  ;;  %3107 = vmatprep.subr.bf16.mxu1 %v3933_v24 }
 0x9c1   :  { %v1376_v19 = vpop.f32.mrb[12].mxu0  ;;  %v1447_v5 = vpop.f32.mrb[12].mxu1 }
 0x9c2   :  { %v1456_v6 = vrot.slane %v1376_v19, 4  ;;  %v1378_v16 = vpop.f32.mrb[13].mxu0  ;;  %v1449_v28 = vpop.f32.mrb[13].mxu1  ;;  %v1458_v52 = vrot.slane %v1447_v5, 4 }
 0x9c3   :  { %v1457_v30 = vrot.slane %v1378_v16, 4  ;;  %v1459_v50 = vrot.slane %v1449_v28, 4 }
 0x9c4   :  { %v1464_v7 = vadd.f32 %v1456_v6, %v4025_v44  ;;  %v1466_v53 = vadd.f32 %v1458_v52, %v4031_v58  ;;  %v1488_v6 = vrot.slane %v4079_v51, 6 }
 0x9c5   :  { %v1465_v17 = vadd.f32 %v1457_v30, %v4019_v35  ;;  %v1467_v46 = vadd.f32 %v1459_v50, %v4033_v0 }
 0x9c6   :  { %v2535_v15 = vmul.f32 -1.442695, %v1464_v7 }
 0x9c7   :  { %v2536_v48 = vmul.f32 -1.442695, %v1465_v17  ;;  %v2537_v14 = vmul.f32 -1.442695, %v1467_v46 }
 0x9c8   :  { %3400 = vpow2.f32 %v2535_v15 }
 0x9c9   :  { %3402 = vpow2.f32 %v2536_v48 }
 0x9ca   :  { %3404 = vpow2.f32 %v2537_v14 }
 0x9cb   :  { %3406 = vtanh.f32 %v1466_v53 }
 0x9d2   :  { %v3401_v55 = vpop.eup %3400 }
 0x9d3   :  { %v3403_v47 = vpop.eup %3402  ;;  %v1471_v54 = vadd.f32 1.0, %v3401_v55 }
 0x9d4   :  { %v1477_v63 = vadd.f32 1.0, %v3403_v47  ;;  %v3405_v60 = vpop.eup %3404 }
 0x9d5   :  { %3408 = vrcp.f32 %v1471_v54  ;;  %v3407_v2 = vpop.eup %3406  ;;  %v1484_v30 = vadd.f32 1.0, %v3405_v60 }
 0x9d6   :  { %3410 = vrcp.f32 %v1477_v63 }
 0x9d7   :  { %3412 = vrcp.f32 %v1484_v30 }
 0x9df   :  { %v3409_v19 = vpop.eup %3408 }
 0x9e0   :  { %v3411_v16 = vpop.eup %3410  ;;  %v1491_v28 = vmul.f32 %v3409_v19, %v3407_v2 }
 0x9e1   :  { %v1490_v5 = vmul.f32 %v3411_v16, %v1488_v6  ;;  %v3413_v17 = vpop.eup %3412 }
 0x9e3   :  { %v4121_v7 = vadd.f32 %v1491_v28, %v1490_v5 }
 0x9e5   :  { %3414 = vtanh.f32 %v4121_v7 }
 0x9ef   :  { %v3415_v15 = vpop.eup %3414 }
 0x9f0   :  { %v1494_v48 = vmul.f32 %v3415_v15, %v3413_v17 }
 0x9f2   :  { %1495 = vst [vmem:[#allocation2] sm:$0x30] %v1494_v48  ;;  %v1497_v50 = vrot.slane %v1494_v48, 4 }
 0x9f4   :  { %1564 = vmatmul.mubr.f32.vlgmr.msra.gmra.mrb[14].mxu0 %v1497_v50  ;;  %1635 = vmatmul.mubr.f32.vlgmr.msra.gmra.mrb[14].mxu1 %v1497_v50  ;;  %v1677_v50 = vrot.slane %v4121_v7, 6 }
 0x9f5   :  { %3077 = vmatpush1.bf16.msra.mxu0 %v3816_v61  ;;  %3109 = vmatpush1.bf16.msra.mxu1 %v3935_v31 }
 0x9f6   :  { %3079 = vmatprep.subr.bf16.mxu0 %v3819_v62  ;;  %3111 = vmatprep.subr.bf16.mxu1 %v3938_v34 }
 0x9f7   :  { %1752 = vmatprep.mubr.f32.mxu0 %v3598_v18  ;;  %1823 = vmatprep.mubr.f32.mxu1 %v3598_v18 }
 0x9f9   :  { %3081 = vmatpush1.bf16.msra.mxu0 %v3824_v3  ;;  %3113 = vmatpush1.bf16.msra.mxu1 %v3943_v41 }
 0x9fa   :  { %3083 = vmatprep.subr.bf16.mxu0 %v3827_v4  ;;  %3115 = vmatprep.subr.bf16.mxu1 %v3946_v43 }
 0x9fd   :  { %3085 = vmatpush1.bf16.msra.mxu0 %v3831_v10  ;;  %3117 = vmatpush1.bf16.msra.mxu1 %v3950_v49 }
 0x9fe   :  { %3087 = vmatprep.subr.bf16.mxu0 %v3835_v11  ;;  %3119 = vmatprep.subr.bf16.mxu1 %v3954_v9 }
 0xa01   :  { %3089 = vmatpush1.bf16.msra.mxu0 %v3838_v20  ;;  %3121 = vmatpush1.bf16.msra.mxu1 %v3957_v1 }
 0xa02   :  { %3091 = vmatprep.subr.bf16.mxu0 %v3841_v21  ;;  %3123 = vmatprep.subr.bf16.mxu1 %v3960_v13 }
 0xa05   :  { %3093 = vmatpush1.bf16.msra.mxu0 %v3844_v26  ;;  %3125 = vmatpush1.bf16.msra.mxu1 %v3963_v8 }
 0xa06   :  { %3095 = vmatprep.subr.bf16.mxu0 %v3847_v27  ;;  %3127 = vmatprep.subr.bf16.mxu1 %v3966_v12 }
 0xa09   :  { %3097 = vmatpush1.bf16.msra.mxu0 %v3850_v32  ;;  %3129 = vmatpush1.bf16.msra.mxu1 %v3969_v23 }
 0xa0a   :  { %3099 = vmatprep.subr.bf16.mxu0 %v3853_v33  ;;  %3131 = vmatprep.subr.bf16.mxu1 %v3972_v25 }
 0xa0d   :  { %3101 = vmatpush1.bf16.msra.mxu0 %v3856_v38  ;;  %3133 = vmatpush1.bf16.msra.mxu1 %v3975_v36 }
 0xa0e   :  { %3103 = vmatprep.subr.bf16.mxu0 %v3859_v39  ;;  %3135 = vmatprep.subr.bf16.mxu1 %v3978_v37 }
 0xa11   :  { %3105 = vmatpush1.bf16.msra.mxu0 %v3862_v42  ;;  %3137 = vmatpush1.bf16.msra.mxu1 %v3981_v45 }
 0xa12   :  { %3139 = vmatprep.subr.bf16.mxu0 %v3814_v56  ;;  %3171 = vmatprep.subr.bf16.mxu1 %v3933_v24 }
 0xac7   :  { %v1565_v51 = vpop.f32.mrb[14].mxu0  ;;  %v1636_v46 = vpop.f32.mrb[14].mxu1 }
 0xac8   :  { %v1645_v52 = vrot.slane %v1565_v51, 2  ;;  %v1567_v14 = vpop.f32.mrb[15].mxu0  ;;  %v1638_v53 = vpop.f32.mrb[15].mxu1  ;;  %v1647_v6 = vrot.slane %v1636_v46, 2 }
 0xac9   :  { %v1646_v55 = vrot.slane %v1567_v14, 2  ;;  %v1648_v2 = vrot.slane %v1638_v53, 2 }
 0xaca   :  { %v1653_v47 = vadd.f32 %v1645_v52, %v4025_v44  ;;  %v1655_v28 = vadd.f32 %v1647_v6, %v4031_v58 }
 0xacb   :  { %v1654_v54 = vadd.f32 %v1646_v55, %v4019_v35  ;;  %v1656_v19 = vadd.f32 %v1648_v2, %v4033_v0 }
 0xacc   :  { %v2538_v63 = vmul.f32 -1.442695, %v1653_v47 }
 0xacd   :  { %v2539_v60 = vmul.f32 -1.442695, %v1654_v54  ;;  %v2540_v16 = vmul.f32 -1.442695, %v1656_v19 }
 0xace   :  { %3416 = vpow2.f32 %v2538_v63 }
 0xacf   :  { %3418 = vpow2.f32 %v2539_v60 }
 0xad0   :  { %3420 = vpow2.f32 %v2540_v16 }
 0xad1   :  { %3422 = vtanh.f32 %v1655_v28 }
 0xad8   :  { %v3417_v30 = vpop.eup %3416 }
 0xad9   :  { %v3419_v5 = vpop.eup %3418  ;;  %v1660_v17 = vadd.f32 1.0, %v3417_v30 }
 0xada   :  { %v1666_v15 = vadd.f32 1.0, %v3419_v5  ;;  %v3421_v35 = vpop.eup %3420 }
 0xadb   :  { %3424 = vrcp.f32 %v1660_v17  ;;  %v3423_v44 = vpop.eup %3422  ;;  %v1673_v0 = vadd.f32 1.0, %v3421_v35 }
 0xadc   :  { %3426 = vrcp.f32 %v1666_v15 }
 0xadd   :  { %3428 = vrcp.f32 %v1673_v0 }
 0xae5   :  { %v3425_v48 = vpop.eup %3424 }
 0xae6   :  { %v3427_v51 = vpop.eup %3426  ;;  %v1680_v52 = vmul.f32 %v3425_v48, %v3423_v44 }
 0xae7   :  { %v1679_v46 = vmul.f32 %v3427_v51, %v1677_v50  ;;  %v3429_v58 = vpop.eup %3428 }
 0xae9   :  { %v4163_v14 = vadd.f32 %v1680_v52, %v1679_v46 }
 0xaeb   :  { %3430 = vtanh.f32 %v4163_v14  ;;  %v1854_v52 = vrot.slane %v4163_v14, 6 }
 0xaf5   :  { %v3431_v53 = vpop.eup %3430 }
 0xaf6   :  { %v1683_v55 = vmul.f32 %v3431_v53, %v3429_v58 }
 0xaf8   :  { %1684 = vst [vmem:[#allocation2] sm:$0xc0] %v1683_v55  ;;  %v1686_v47 = vrot.slane %v1683_v55, 6 }
 0xafa   :  { %1753 = vmatmul.mubr.f32.vlgmr.msra.gmra.mrb[16].mxu0 %v1686_v47  ;;  %1824 = vmatmul.mubr.f32.vlgmr.msra.gmra.mrb[16].mxu1 %v1686_v47 }
 0xafb   :  { %3141 = vmatpush1.bf16.msra.mxu0 %v3816_v61  ;;  %3173 = vmatpush1.bf16.msra.mxu1 %v3935_v31 }
 0xafc   :  { %3143 = vmatprep.subr.bf16.mxu0 %v3819_v62  ;;  %3175 = vmatprep.subr.bf16.mxu1 %v3938_v34 }
 0xafd   :  { %1926 = vmatprep.mubr.f32.mxu0 %v3598_v18  ;;  %1997 = vmatprep.mubr.f32.mxu1 %v3598_v18 }
 0xaff   :  { %3145 = vmatpush1.bf16.msra.mxu0 %v3824_v3  ;;  %3177 = vmatpush1.bf16.msra.mxu1 %v3943_v41 }
 0xb00   :  { %3147 = vmatprep.subr.bf16.mxu0 %v3827_v4  ;;  %3179 = vmatprep.subr.bf16.mxu1 %v3946_v43 }
 0xb03   :  { %3149 = vmatpush1.bf16.msra.mxu0 %v3831_v10  ;;  %3181 = vmatpush1.bf16.msra.mxu1 %v3950_v49 }
 0xb04   :  { %3151 = vmatprep.subr.bf16.mxu0 %v3835_v11  ;;  %3183 = vmatprep.subr.bf16.mxu1 %v3954_v9 }
 0xb07   :  { %3153 = vmatpush1.bf16.msra.mxu0 %v3838_v20  ;;  %3185 = vmatpush1.bf16.msra.mxu1 %v3957_v1 }
 0xb08   :  { %3155 = vmatprep.subr.bf16.mxu0 %v3841_v21  ;;  %3187 = vmatprep.subr.bf16.mxu1 %v3960_v13 }
 0xb0b   :  { %3157 = vmatpush1.bf16.msra.mxu0 %v3844_v26  ;;  %3189 = vmatpush1.bf16.msra.mxu1 %v3963_v8 }
 0xb0c   :  { %3159 = vmatprep.subr.bf16.mxu0 %v3847_v27  ;;  %3191 = vmatprep.subr.bf16.mxu1 %v3966_v12 }
 0xb0f   :  { %3161 = vmatpush1.bf16.msra.mxu0 %v3850_v32  ;;  %3193 = vmatpush1.bf16.msra.mxu1 %v3969_v23 }
 0xb10   :  { %3163 = vmatprep.subr.bf16.mxu0 %v3853_v33  ;;  %3195 = vmatprep.subr.bf16.mxu1 %v3972_v25 }
 0xb13   :  { %3165 = vmatpush1.bf16.msra.mxu0 %v3856_v38  ;;  %3197 = vmatpush1.bf16.msra.mxu1 %v3975_v36 }
 0xb14   :  { %3167 = vmatprep.subr.bf16.mxu0 %v3859_v39  ;;  %3199 = vmatprep.subr.bf16.mxu1 %v3978_v37 }
 0xb17   :  { %3169 = vmatpush1.bf16.msra.mxu0 %v3862_v42  ;;  %3201 = vmatpush1.bf16.msra.mxu1 %v3981_v45 }
 0xb18   :  { %3203 = vmatprep.subr.bf16.mxu0 %v3814_v56  ;;  %3235 = vmatprep.subr.bf16.mxu1 %v3933_v24 }
 0xbcd   :  { %v1754_v7 = vpop.f32.mrb[16].mxu0  ;;  %v1825_v54 = vpop.f32.mrb[16].mxu1 }
 0xbce   :  { %v1830_v63 = vadd.f32 %v1754_v7, %v3909_v57  ;;  %v1756_v60 = vpop.f32.mrb[17].mxu0  ;;  %v1827_v2 = vpop.f32.mrb[17].mxu1  ;;  %v1832_v5 = vadd.f32 %v1825_v54, %v4015_v29 }
 0xbcf   :  { %v1831_v19 = vadd.f32 %v1756_v60, %v3912_v59  ;;  %v1833_v28 = vadd.f32 %v1827_v2, %v4021_v40 }
 0xbd0   :  { %v2541_v6 = vmul.f32 -1.442695, %v1830_v63 }
 0xbd1   :  { %v2542_v16 = vmul.f32 -1.442695, %v1831_v19  ;;  %v2543_v30 = vmul.f32 -1.442695, %v1833_v28 }
 0xbd2   :  { %3432 = vpow2.f32 %v2541_v6 }
 0xbd3   :  { %3434 = vpow2.f32 %v2542_v16 }
 0xbd4   :  { %3436 = vpow2.f32 %v2543_v30 }
 0xbd5   :  { %3438 = vtanh.f32 %v1832_v5 }
 0xbdc   :  { %v3433_v17 = vpop.eup %3432 }
 0xbdd   :  { %v3435_v15 = vpop.eup %3434  ;;  %v1837_v35 = vadd.f32 1.0, %v3433_v17 }
 0xbde   :  { %v1843_v44 = vadd.f32 1.0, %v3435_v15  ;;  %v3437_v48 = vpop.eup %3436 }
 0xbdf   :  { %3440 = vrcp.f32 %v1837_v35  ;;  %v3439_v50 = vpop.eup %3438  ;;  %v1850_v58 = vadd.f32 1.0, %v3437_v48 }
 0xbe0   :  { %3442 = vrcp.f32 %v1843_v44 }
 0xbe1   :  { %3444 = vrcp.f32 %v1850_v58 }
 0xbe9   :  { %v3441_v51 = vpop.eup %3440 }
 0xbea   :  { %v3443_v0 = vpop.eup %3442  ;;  %v1857_v46 = vmul.f32 %v3441_v51, %v3439_v50 }
 0xbeb   :  { %v1856_v53 = vmul.f32 %v3443_v0, %v1854_v52  ;;  %v3445_v47 = vpop.eup %3444 }
 0xbed   :  { %v4205_v55 = vadd.f32 %v1857_v46, %v1856_v53 }
 0xbef   :  { %3446 = vtanh.f32 %v4205_v55  ;;  %v2040_v58 = vrot.slane %v4205_v55, 6 }
 0xbf9   :  { %v3447_v7 = vpop.eup %3446 }
 0xbfa   :  { %v1860_v54 = vmul.f32 %v3447_v7, %v3445_v47 }
 0xbfc   :  { %1861 = vst [vmem:[#allocation2 + $0x8] sm:$0x3] %v1860_v54  ;;  %1927 = vmatmul.mubr.f32.vlgmr.msra.gmra.mrb[18].mxu0 %v1860_v54  ;;  %1998 = vmatmul.mubr.f32.vlgmr.msra.gmra.mrb[18].mxu1 %v1860_v54 }
 0xbfd   :  { %3205 = vmatpush1.bf16.msra.mxu0 %v3816_v61  ;;  %3237 = vmatpush1.bf16.msra.mxu1 %v3935_v31 }
 0xbfe   :  { %3207 = vmatprep.subr.bf16.mxu0 %v3819_v62  ;;  %3239 = vmatprep.subr.bf16.mxu1 %v3938_v34 }
 0xbff   :  { %2115 = vmatprep.mubr.f32.mxu0 %v3598_v18  ;;  %2186 = vmatprep.mubr.f32.mxu1 %v3598_v18 }
 0xc01   :  { %3209 = vmatpush1.bf16.msra.mxu0 %v3824_v3  ;;  %3241 = vmatpush1.bf16.msra.mxu1 %v3943_v41 }
 0xc02   :  { %3211 = vmatprep.subr.bf16.mxu0 %v3827_v4  ;;  %3243 = vmatprep.subr.bf16.mxu1 %v3946_v43 }
 0xc05   :  { %3213 = vmatpush1.bf16.msra.mxu0 %v3831_v10  ;;  %3245 = vmatpush1.bf16.msra.mxu1 %v3950_v49 }
 0xc06   :  { %3215 = vmatprep.subr.bf16.mxu0 %v3835_v11  ;;  %3247 = vmatprep.subr.bf16.mxu1 %v3954_v9 }
 0xc09   :  { %3217 = vmatpush1.bf16.msra.mxu0 %v3838_v20  ;;  %3249 = vmatpush1.bf16.msra.mxu1 %v3957_v1 }
 0xc0a   :  { %3219 = vmatprep.subr.bf16.mxu0 %v3841_v21  ;;  %3251 = vmatprep.subr.bf16.mxu1 %v3960_v13 }
 0xc0d   :  { %3221 = vmatpush1.bf16.msra.mxu0 %v3844_v26  ;;  %3253 = vmatpush1.bf16.msra.mxu1 %v3963_v8 }
 0xc0e   :  { %3223 = vmatprep.subr.bf16.mxu0 %v3847_v27  ;;  %3255 = vmatprep.subr.bf16.mxu1 %v3966_v12 }
 0xc11   :  { %3225 = vmatpush1.bf16.msra.mxu0 %v3850_v32  ;;  %3257 = vmatpush1.bf16.msra.mxu1 %v3969_v23 }
 0xc12   :  { %3227 = vmatprep.subr.bf16.mxu0 %v3853_v33  ;;  %3259 = vmatprep.subr.bf16.mxu1 %v3972_v25 }
 0xc15   :  { %3229 = vmatpush1.bf16.msra.mxu0 %v3856_v38  ;;  %3261 = vmatpush1.bf16.msra.mxu1 %v3975_v36 }
 0xc16   :  { %3231 = vmatprep.subr.bf16.mxu0 %v3859_v39  ;;  %3263 = vmatprep.subr.bf16.mxu1 %v3978_v37 }
 0xc19   :  { %3233 = vmatpush1.bf16.msra.mxu0 %v3862_v42  ;;  %3265 = vmatpush1.bf16.msra.mxu1 %v3981_v45 }
 0xc1a   :  { %3267 = vmatprep.subr.bf16.mxu0 %v3814_v56  ;;  %3299 = vmatprep.subr.bf16.mxu1 %v3933_v24 }
 0xccf   :  { %v1928_v14 = vpop.f32.mrb[18].mxu0  ;;  %v1999_v63 = vpop.f32.mrb[18].mxu1 }
 0xcd0   :  { %v2008_v60 = vrot.slane %v1928_v14, 6  ;;  %v1930_v2 = vpop.f32.mrb[19].mxu0  ;;  %v2001_v19 = vpop.f32.mrb[19].mxu1  ;;  %v2010_v56 = vrot.slane %v1999_v63, 6 }
 0xcd1   :  { %v2009_v6 = vrot.slane %v1930_v2, 6  ;;  %v2011_v17 = vrot.slane %v2001_v19, 6 }
 0xcd2   :  { %v2016_v16 = vadd.f32 %v2008_v60, %v3909_v57  ;;  %v2018_v24 = vadd.f32 %v2010_v56, %v4015_v29 }
 0xcd3   :  { %v2017_v28 = vadd.f32 %v2009_v6, %v3912_v59  ;;  %v2019_v15 = vadd.f32 %v2011_v17, %v4021_v40 }
 0xcd4   :  { %v2544_v30 = vmul.f32 -1.442695, %v2016_v16 }
 0xcd5   :  { %v2545_v5 = vmul.f32 -1.442695, %v2017_v28  ;;  %v2546_v35 = vmul.f32 -1.442695, %v2019_v15 }
 0xcd6   :  { %3448 = vpow2.f32 %v2544_v30 }
 0xcd7   :  { %3450 = vpow2.f32 %v2545_v5 }
 0xcd8   :  { %3452 = vpow2.f32 %v2546_v35 }
 0xcd9   :  { %3454 = vtanh.f32 %v2018_v24 }
 0xce0   :  { %v3449_v44 = vpop.eup %3448 }
 0xce1   :  { %v3451_v48 = vpop.eup %3450  ;;  %v2023_v50 = vadd.f32 1.0, %v3449_v44 }
 0xce2   :  { %v2029_v51 = vadd.f32 1.0, %v3451_v48  ;;  %v3453_v52 = vpop.eup %3452 }
 0xce3   :  { %3456 = vrcp.f32 %v2023_v50  ;;  %v3455_v0 = vpop.eup %3454  ;;  %v2036_v7 = vadd.f32 1.0, %v3453_v52 }
 0xce4   :  { %3458 = vrcp.f32 %v2029_v51 }
 0xce5   :  { %3460 = vrcp.f32 %v2036_v7 }
 0xced   :  { %v3457_v46 = vpop.eup %3456 }
 0xcee   :  { %v3459_v53 = vpop.eup %3458  ;;  %v2043_v47 = vmul.f32 %v3457_v46, %v3455_v0 }
 0xcef   :  { %v2042_v54 = vmul.f32 %v3459_v53, %v2040_v58  ;;  %v3461_v63 = vpop.eup %3460 }
 0xcf1   :  { %v4247_v14 = vadd.f32 %v2043_v47, %v2042_v54 }
 0xcf3   :  { %3462 = vtanh.f32 %v4247_v14 }
 0xcfd   :  { %v3463_v60 = vpop.eup %3462 }
 0xcfe   :  { %v2046_v2 = vmul.f32 %v3463_v60, %v3461_v63 }
 0xd00   :  { %2047 = vst [vmem:[#allocation2 + $0x8] sm:$0xc] %v2046_v2  ;;  %v2049_v19 = vrot.slane %v2046_v2, 2 }
 0xd02   :  { %2116 = vmatmul.mubr.f32.vlgmr.msra.gmra.mrb[20].mxu0 %v2049_v19  ;;  %2187 = vmatmul.mubr.f32.vlgmr.msra.gmra.mrb[20].mxu1 %v2049_v19  ;;  %v2427_v19 = vld [vmem:[#allocation2] sm:$0xff] }
 0xd03   :  { %3269 = vmatpush1.bf16.msra.mxu0 %v3816_v61  ;;  %3301 = vmatpush1.bf16.msra.mxu1 %v3935_v31 }
 0xd04   :  { %3271 = vmatprep.subr.bf16.mxu0 %v3819_v62  ;;  %3303 = vmatprep.subr.bf16.mxu1 %v3938_v34 }
 0xd05   :  { %2304 = vmatprep.mubr.f32.mxu0 %v3598_v18  ;;  %2375 = vmatprep.mubr.f32.mxu1 %v3598_v18 }
 0xd07   :  { %3273 = vmatpush1.bf16.msra.mxu0 %v3824_v3  ;;  %3305 = vmatpush1.bf16.msra.mxu1 %v3943_v41 }
 0xd08   :  { %3275 = vmatprep.subr.bf16.mxu0 %v3827_v4  ;;  %3307 = vmatprep.subr.bf16.mxu1 %v3946_v43 }
 0xd0b   :  { %3277 = vmatpush1.bf16.msra.mxu0 %v3831_v10  ;;  %3309 = vmatpush1.bf16.msra.mxu1 %v3950_v49 }
 0xd0c   :  { %3279 = vmatprep.subr.bf16.mxu0 %v3835_v11  ;;  %3311 = vmatprep.subr.bf16.mxu1 %v3954_v9 }
 0xd0f   :  { %3281 = vmatpush1.bf16.msra.mxu0 %v3838_v20  ;;  %3313 = vmatpush1.bf16.msra.mxu1 %v3957_v1  ;;  %v2229_v1 = vrot.slane %v4247_v14, 6 }
 0xd10   :  { %3283 = vmatprep.subr.bf16.mxu0 %v3841_v21  ;;  %3315 = vmatprep.subr.bf16.mxu1 %v3960_v13 }
 0xd13   :  { %3285 = vmatpush1.bf16.msra.mxu0 %v3844_v26  ;;  %3317 = vmatpush1.bf16.msra.mxu1 %v3963_v8 }
 0xd14   :  { %3287 = vmatprep.subr.bf16.mxu0 %v3847_v27  ;;  %3319 = vmatprep.subr.bf16.mxu1 %v3966_v12 }
 0xd17   :  { %3289 = vmatpush1.bf16.msra.mxu0 %v3850_v32  ;;  %3321 = vmatpush1.bf16.msra.mxu1 %v3969_v23 }
 0xd18   :  { %3291 = vmatprep.subr.bf16.mxu0 %v3853_v33  ;;  %3323 = vmatprep.subr.bf16.mxu1 %v3972_v25 }
 0xd1b   :  { %3293 = vmatpush1.bf16.msra.mxu0 %v3856_v38  ;;  %3325 = vmatpush1.bf16.msra.mxu1 %v3975_v36 }
 0xd1c   :  { %3295 = vmatprep.subr.bf16.mxu0 %v3859_v39  ;;  %3327 = vmatprep.subr.bf16.mxu1 %v3978_v37 }
 0xd1f   :  { %3297 = vmatpush1.bf16.msra.mxu0 %v3862_v42  ;;  %3329 = vmatpush1.bf16.msra.mxu1 %v3981_v45 }
 0xd20   :  { %3330 = vmatprep.subr.bf16.mxu0 %v3599_v22 }
 0xdd5   :  { %v2117_v61 = vpop.f32.mrb[20].mxu0  ;;  %v2188_v62 = vpop.f32.mrb[20].mxu1 }
 0xdd6   :  { %v2197_v3 = vrot.slane %v2117_v61, 4  ;;  %v2119_v4 = vpop.f32.mrb[21].mxu0  ;;  %v2190_v10 = vpop.f32.mrb[21].mxu1  ;;  %v2199_v38 = vrot.slane %v2188_v62, 4 }
 0xdd7   :  { %v2198_v11 = vrot.slane %v2119_v4, 4  ;;  %v2200_v32 = vrot.slane %v2190_v10, 4  ;;  %v2430_v4 = vstv %s4317_s13 }
 0xdd8   :  { %v2205_v20 = vadd.f32 %v2197_v3, %v3909_v57  ;;  %v2207_v42 = vadd.f32 %v2199_v38, %v4015_v29  ;;  %v2426_v3 = vld [vmem:[%s4316_s12] sm:$0x1] }
 0xdd9   :  { %v2206_v21 = vadd.f32 %v2198_v11, %v3912_v59  ;;  %v2208_v33 = vadd.f32 %v2200_v32, %v4021_v40 }
 0xdda   :  { %v2547_v26 = vmul.f32 -1.442695, %v2205_v20 }
 0xddb   :  { %v2548_v27 = vmul.f32 -1.442695, %v2206_v21  ;;  %v2549_v39 = vmul.f32 -1.442695, %v2208_v33 }
 0xddc   :  { %3464 = vpow2.f32 %v2547_v26 }
 0xddd   :  { %3466 = vpow2.f32 %v2548_v27 }
 0xdde   :  { %3468 = vpow2.f32 %v2549_v39 }
 0xddf   :  { %3470 = vtanh.f32 %v2207_v42 }
 0xde6   :  { %v3465_v22 = vpop.eup %3464 }
 0xde7   :  { %v3467_v31 = vpop.eup %3466  ;;  %v2212_v34 = vadd.f32 1.0, %v3465_v22 }
 0xde8   :  { %v2218_v41 = vadd.f32 1.0, %v3467_v31  ;;  %v3469_v43 = vpop.eup %3468 }
 0xde9   :  { %3472 = vrcp.f32 %v2212_v34  ;;  %v3471_v49 = vpop.eup %3470  ;;  %v2225_v12 = vadd.f32 1.0, %v3469_v43 }
 0xdea   :  { %3474 = vrcp.f32 %v2218_v41 }
 0xdeb   :  { %3476 = vrcp.f32 %v2225_v12 }
 0xdf3   :  { %v3473_v9 = vpop.eup %3472 }
 0xdf4   :  { %v3475_v13 = vpop.eup %3474  ;;  %v2232_v8 = vmul.f32 %v3473_v9, %v3471_v49 }
 0xdf5   :  { %v2231_v23 = vmul.f32 %v3475_v13, %v2229_v1  ;;  %v3477_v36 = vpop.eup %3476 }
 0xdf7   :  { %v2233_v25 = vadd.f32 %v2232_v8, %v2231_v23 }
 0xdf9   :  { %3478 = vtanh.f32 %v2233_v25  ;;  %v2418_v47 = vrot.slane %v2233_v25, 6 }
 0xe03   :  { %v3479_v37 = vpop.eup %3478 }
 0xe04   :  { %v2235_v45 = vmul.f32 %v3479_v37, %v3477_v36 }
 0xe06   :  { %2236 = vst [vmem:[#allocation2 + $0x8] sm:$0x30] %v2235_v45  ;;  %v2238_v55 = vrot.slane %v2235_v45, 4 }
 0xe08   :  { %2305 = vmatmul.mubr.f32.vlgmr.msra.gmra.mrb[22].mxu0 %v2238_v55  ;;  %2376 = vmatmul.mubr.f32.vlgmr.msra.gmra.mrb[22].mxu1 %v2238_v55 }
 0xe09   :  { %2684 = vmatprep.mubr.msk.f32.mxu0 %vm3600_vm5, %v3598_v18 }
 0xedb   :  { %v2306_v6 = vpop.f32.mrb[22].mxu0  ;;  %v2377_v16 = vpop.f32.mrb[22].mxu1 }
 0xedc   :  { %v2386_v28 = vrot.slane %v2306_v6, 2  ;;  %v2308_v30 = vpop.f32.mrb[23].mxu0  ;;  %v2379_v5 = vpop.f32.mrb[23].mxu1  ;;  %v2388_v50 = vrot.slane %v2377_v16, 2 }
 0xedd   :  { %v2387_v17 = vrot.slane %v2308_v30, 2  ;;  %v2389_v44 = vrot.slane %v2379_v5, 2 }
 0xede   :  { %v2394_v15 = vadd.f32 %v2386_v28, %v3909_v57  ;;  %v2396_v18 = vadd.f32 %v2388_v50, %v4015_v29 }
 0xedf   :  { %v2395_v56 = vadd.f32 %v2387_v17, %v3912_v59  ;;  %v2397_v48 = vadd.f32 %v2389_v44, %v4021_v40 }
 0xee0   :  { %v2550_v35 = vmul.f32 -1.442695, %v2394_v15 }
 0xee1   :  { %v2551_v24 = vmul.f32 -1.442695, %v2395_v56  ;;  %v2552_v51 = vmul.f32 -1.442695, %v2397_v48 }
 0xee2   :  { %3480 = vpow2.f32 %v2550_v35 }
 0xee3   :  { %3482 = vpow2.f32 %v2551_v24 }
 0xee4   :  { %3484 = vpow2.f32 %v2552_v51 }
 0xee5   :  { %3486 = vtanh.f32 %v2396_v18 }
 0xeec   :  { %v3481_v52 = vpop.eup %3480 }
 0xeed   :  { %v3483_v0 = vpop.eup %3482  ;;  %v2401_v46 = vadd.f32 1.0, %v3481_v52 }
 0xeee   :  { %v2407_v58 = vadd.f32 1.0, %v3483_v0  ;;  %v3485_v57 = vpop.eup %3484 }
 0xeef   :  { %3488 = vrcp.f32 %v2401_v46  ;;  %v3487_v59 = vpop.eup %3486  ;;  %v2414_v14 = vadd.f32 1.0, %v3485_v57 }
 0xef0   :  { %3490 = vrcp.f32 %v2407_v58 }
 0xef1   :  { %3492 = vrcp.f32 %v2414_v14 }
 0xef9   :  { %v3489_v53 = vpop.eup %3488 }
 0xefa   :  { %v3491_v7 = vpop.eup %3490  ;;  %v2421_v54 = vmul.f32 %v3489_v53, %v3487_v59 }
 0xefb   :  { %v2420_v40 = vmul.f32 %v3491_v7, %v2418_v47  ;;  %v3493_v29 = vpop.eup %3492 }
 0xefd   :  { %v2422_v63 = vadd.f32 %v2421_v54, %v2420_v40 }
 0xeff   :  { %3494 = vtanh.f32 %v2422_v63 }
 0xf09   :  { %v3495_v60 = vpop.eup %3494 }
 0xf0a   :  { %v2424_v2 = vmul.f32 %v3495_v60, %v3493_v29 }
 0xf0c   :  { %2425 = vst [vmem:[#allocation2 + $0x8] sm:$0xc0] %v2424_v2 }
 0xf13   :  { %v2428_v61 = vld [vmem:[#allocation2 + $0x8] sm:$0xff] }
 0xf14   :  { %v3331_v62 = vpack.c.bf16 %v2428_v61, %v2427_v19 }
 0xf16   :  { %3332 = vmatpush3.bf16.xpose.msra.mxu0 %v3331_v62 }
 0xf1d   :  { %2685 = vmatmul.mubr.f32.vlgmr.msra.gmra.mrb[24].mxu0 %v2426_v3 }
 0xff0   :  { %v2497_v10 = vpop.f32.mrb[24].mxu0 }
 0xff1   :  { %v2498_v11 = vadd.f32 %v2497_v10, %v2430_v4  ;;  %v2686_v20 = vpop.f32.mrb[25].mxu0 }
 0xff3   :  { %2502 = vst.msk [vmem:[%s4324_s20] sm:$0x1] %vm2501_vm6, %v2498_v11 }
 0xff4   :  { %2508 = vsyncpa [#allocation6], 1 }
 0xff5   :  { %2509 = vsyncpa [#allocation8], 1 }
 0xff6   :  { %2510 = vsyncpa [#allocation11], 1 }

</bundles_post_ra>
